<compile_context>
chip_gen: v5e
topology: v5e:2x2
jax: 0.10.0
libtpu: 0.0.40
codegen_flags: <defaults>
</compile_context>

<pallas_src>
import math
import jax
import jax.numpy as jnp
from jax.experimental import pallas as pl
from jax.experimental.pallas import tpu as pltpu

IN_DIM = 2
HIDDEN = 100
OUT_DIM = 1
NUM_HIDDEN = 6          # number of 100->100 linear layers
FP = 128                # padded hidden width (lanes)
W1_ROWS = 8             # first-layer weight rows padded 2 -> 8 (sublane tile)
OUT_PAD = 8             # narrow padded output width
TM_MAX = 512            # default batch tile (sweep 512-1024 for very large N)
ROW_CHUNK = 256         # rows pushed through the 7-layer chain while in vregs


def _make_kernel(tm, chunk):
    # Chunk boundaries are static Python ints -> fully unrolled, aligned slices.
    row_starts = list(range(0, tm, chunk))

    def kernel(x_ref, w1_ref, b1_ref, wh_ref, bh_ref, wo_ref, bo_ref, o_ref):
        w1 = w1_ref[...]                               # (8, 128) f32, rows 0/1 real
        b1 = b1_ref[...]                               # (1, 128) f32
        wo = wo_ref[...]                               # (1, 128) f32
        bo = bo_ref[...]                               # (1, OUT_PAD) f32

        for r0 in row_starts:
            csize = min(chunk, tm - r0)
            x = x_ref[pl.ds(r0, csize), :]             # (csize, 2)
            t = x[:, 0:1]
            s = x[:, 1:2]

            # ---- layer 1: (csize,2) -> (csize,128) on the VPU (two FMAs), f32.
            # Padded lanes have zero weight/bias -> stay tanh(0) = 0 (exact).
            h = jnp.tanh(t * w1[0:1, :] + s * w1[1:2, :] + b1)

            # ---- six hidden layers on the MXU: bf16 inputs, f32 accumulation.
            # h never round-trips through a VMEM scratch between layers.
            for i in range(NUM_HIDDEN):
                h = jnp.tanh(
                    jnp.dot(h.astype(jnp.bfloat16), wh_ref[i],
                            preferred_element_type=jnp.float32)
                    + bh_ref[i]
                )

            # ---- output layer 100 -> 1: VPU multiply + XLU lane reduce, f32.
            out = jnp.sum(h * wo, axis=-1, keepdims=True)        # (csize, 1)
            o_ref[pl.ds(r0, csize), :] = out + bo                # (csize, OUT_PAD)

    return kernel


def _choose_tm(n, tm_max=TM_MAX):
    """Large tile for MXU occupancy; for small batches keep >= 2 grid steps
    (always made even in the wrapper) and a multiple of 8 sublanes."""
    if n >= 2 * tm_max:
        return tm_max
    tm = -(-n // 2)          # ceil(n/2) -> at least two grid steps
    tm = -(-tm // 8) * 8     # round up to a multiple of 8
    return max(8, min(tm, tm_max))


def pinns_forward(x, params, tm_max=TM_MAX):
    """x: (N, 2) float32 -> (N, 1) float32."""
    w1p, b1p, whp, bhp, wop, bop = params
    n = x.shape[0]
    tm = _choose_tm(n, tm_max)

    # Even grid-step count so both v7x TensorCores get balanced work.
    n_pad = pl.cdiv(n, 2 * tm) * (2 * tm)

    # Pad only the batch dim; the feature dim stays 2 (no 128-lane padding).
    xp = jnp.zeros((n_pad, IN_DIM), jnp.float32).at[:n, :].set(x)

    chunk = min(tm, ROW_CHUNK)
    kernel = _make_kernel(tm, chunk)

    weight_bytes = (w1p.size * 4 + b1p.size * 4 + whp.size * 2 +
                    bhp.size * 4 + wop.size * 4 + bop.size * 4)
    cost = pl.CostEstimate(
        flops=2 * n_pad * (NUM_HIDDEN * FP * FP + FP * (IN_DIM + 1)),
        transcendentals=(NUM_HIDDEN + 1) * n_pad * FP,
        bytes_accessed=n_pad * (IN_DIM + OUT_PAD) * 4 + weight_bytes,
    )

    out_padded = pl.pallas_call(
        kernel,
        out_shape=jax.ShapeDtypeStruct((n_pad, OUT_PAD), jnp.float32),
        grid_spec=pltpu.PrefetchScalarGridSpec(
            num_scalar_prefetch=0,
            grid=(n_pad // tm,),
            in_specs=[
                pl.BlockSpec((tm, IN_DIM), lambda i: (i, 0)),               # x tile (N,2)
                pl.BlockSpec((W1_ROWS, FP), lambda i: (0, 0)),              # W1 (rows 0,1 real)
                pl.BlockSpec((1, FP), lambda i: (0, 0)),                    # b1
                pl.BlockSpec((NUM_HIDDEN, FP, FP), lambda i: (0, 0, 0)),    # Wh stack (bf16)
                pl.BlockSpec((NUM_HIDDEN, 1, FP), lambda i: (0, 0, 0)),     # bh stack
                pl.BlockSpec((1, FP), lambda i: (0, 0)),                    # Wo row
                pl.BlockSpec((1, OUT_PAD), lambda i: (0, 0)),               # bo
            ],
            out_specs=pl.BlockSpec((tm, OUT_PAD), lambda i: (i, 0)),
        ),
        compiler_params=pltpu.CompilerParams(
            dimension_semantics=("parallel",),
        ),
        cost_estimate=cost,
    )(xp, w1p, b1p, whp, bhp, wop, bop)

    return out_padded[:n, :OUT_DIM]


def init_params(key):
    """Deterministic PyTorch-Linear-style init (uniform +-1/sqrt(fan_in)),
    stored both raw (f32) and zero-padded into kernel-friendly layouts."""
    keys = jax.random.split(key, 2 * (NUM_HIDDEN + 2))

    def linear(kw, kb, fan_in, fan_out):
        bound = 1.0 / math.sqrt(fan_in)
        w = jax.random.uniform(kw, (fan_in, fan_out), jnp.float32, -bound, bound)
        b = jax.random.uniform(kb, (fan_out,), jnp.float32, -bound, bound)
        return w, b

    w1, b1 = linear(keys[0], keys[1], IN_DIM, HIDDEN)
    wh_list, bh_list = [], []
    for j in range(NUM_HIDDEN):
        w, b = linear(keys[2 + 2 * j], keys[3 + 2 * j], HIDDEN, HIDDEN)
        wh_list.append(w)
        bh_list.append(b)
    wo, bo = linear(keys[-2], keys[-1], HIDDEN, OUT_DIM)

    # Zero-padded kernel layouts (padding is exact -> padded lanes stay 0).
    w1p = jnp.zeros((W1_ROWS, FP), jnp.float32).at[:IN_DIM, :HIDDEN].set(w1)
    b1p = jnp.zeros((1, FP), jnp.float32).at[0, :HIDDEN].set(b1)
    whp = jnp.zeros((NUM_HIDDEN, FP, FP), jnp.float32).at[:, :HIDDEN, :HIDDEN].set(
        jnp.stack(wh_list)
    ).astype(jnp.bfloat16)                               # bf16 MXU weights
    bhp = jnp.zeros((NUM_HIDDEN, 1, FP), jnp.float32).at[:, 0, :HIDDEN].set(
        jnp.stack(bh_list)
    )
    wop = jnp.zeros((1, FP), jnp.float32).at[0, :HIDDEN].set(wo[:, 0])
    bop = jnp.full((1, OUT_PAD), bo[0], jnp.float32)     # same scalar in all lanes

    raw = (w1, b1, wh_list, bh_list, wo, bo)
    padded = (w1p, b1p, whp, bhp, wop, bop)
    return padded, raw


def reference_forward(x, raw):
    """Pure-JAX f32 reference of the PyTorch forward."""
    w1, b1, wh_list, bh_list, wo, bo = raw
    with jax.default_matmul_precision("highest"):
        h = jnp.tanh(x @ w1 + b1)
        for w, b in zip(wh_list, bh_list):
            h = jnp.tanh(h @ w + b)
        return h @ wo + bo


def reference_forward_matched(x, raw):
    """Pure-JAX reference using the same bf16 hidden-matmul quantization as the
    kernel (f32 first/output layers, f32 accumulation) for a tight check."""
    w1, b1, wh_list, bh_list, wo, bo = raw
    h = jnp.tanh(x[:, 0:1] * w1[0:1, :] + x[:, 1:2] * w1[1:2, :] + b1)
    for w, b in zip(wh_list, bh_list):
        h = jnp.tanh(
            jnp.dot(h.astype(jnp.bfloat16), w.astype(jnp.bfloat16),
                    preferred_element_type=jnp.float32) + b
        )
    return jnp.sum(h * wo[:, 0][None, :], axis=-1, keepdims=True) + bo


if __name__ == "__main__":
    key = jax.random.PRNGKey(0)
    pkey, xkey = jax.random.split(key)

    padded_params, raw_params = init_params(pkey)

    # Small batch of (t, x) collocation points, shape (N, 2).
    N = 256
    x = jax.random.uniform(xkey, (N, IN_DIM), jnp.float32, 0.0, 1.0)

    out = pinns_forward(x, padded_params)
    out = jax.block_until_ready(out)

    ref_match = reference_forward_matched(x, raw_params)   # same bf16 quantization
    ref_f32 = reference_forward(x, raw_params)              # full f32 reference

    assert out.shape == (N, OUT_DIM)
    assert jnp.allclose(out, ref_match, atol=1e-4, rtol=1e-3), \
        "mismatch vs bf16-matched reference"
    assert jnp.allclose(out, ref_f32, atol=5e-2, rtol=5e-2), \
        "excessive drift vs f32 reference"

    # TODO(synk): loss_func / train use torch.autograd + LBFGS (not part of the
    # forward pass); only the forward MLP is implemented as a Pallas kernel.
    print("KERNEL_OK")
</pallas_src>

<mosaic_0001>
module attributes {stable_mosaic.version = 11 : i64} {
  func.func @kernel(%arg0: i32, %arg1: memref<128x2xf32, #tpu.memory_space<vmem>>, %arg2: memref<8x128xf32, #tpu.memory_space<vmem>>, %arg3: memref<1x128xf32, #tpu.memory_space<vmem>>, %arg4: memref<6x128x128xbf16, #tpu.memory_space<vmem>>, %arg5: memref<6x1x128xf32, #tpu.memory_space<vmem>>, %arg6: memref<1x128xf32, #tpu.memory_space<vmem>>, %arg7: memref<1x8xf32, #tpu.memory_space<vmem>>, %arg8: memref<128x8xf32, #tpu.memory_space<vmem>>) attributes {dimension_semantics = [#tpu.dimension_semantics<parallel>], iteration_bounds = array<i64: 2>, scalar_prefetch = 0 : i64, scratch_operands = 0 : i64, tpu.core_type = #tpu.core_type<tc>, window_params = [{transform_indices = @transform_0, window_bounds = array<i64: 128, 2>}, {pipeline_mode = #tpu.pipeline_mode<synchronous>, transform_indices = @transform_1, window_bounds = array<i64: 8, 128>}, {pipeline_mode = #tpu.pipeline_mode<synchronous>, transform_indices = @transform_2, window_bounds = array<i64: 1, 128>}, {pipeline_mode = #tpu.pipeline_mode<synchronous>, transform_indices = @transform_3, window_bounds = array<i64: 6, 128, 128>}, {pipeline_mode = #tpu.pipeline_mode<synchronous>, transform_indices = @transform_4, window_bounds = array<i64: 6, 1, 128>}, {pipeline_mode = #tpu.pipeline_mode<synchronous>, transform_indices = @transform_5, window_bounds = array<i64: 1, 128>}, {pipeline_mode = #tpu.pipeline_mode<synchronous>, transform_indices = @transform_6, window_bounds = array<i64: 1, 8>}, {transform_indices = @transform_7, window_bounds = array<i64: 128, 8>}]} {
    %c0 = arith.constant 0 : index
    %c0_0 = arith.constant 0 : index
    %0 = vector.load %arg2[%c0, %c0_0] : memref<8x128xf32, #tpu.memory_space<vmem>>, vector<8x128xf32>
    %c0_1 = arith.constant 0 : index
    %c0_2 = arith.constant 0 : index
    %1 = vector.load %arg3[%c0_1, %c0_2] : memref<1x128xf32, #tpu.memory_space<vmem>>, vector<1x128xf32>
    %c0_3 = arith.constant 0 : index
    %c0_4 = arith.constant 0 : index
    %2 = vector.load %arg6[%c0_3, %c0_4] : memref<1x128xf32, #tpu.memory_space<vmem>>, vector<1x128xf32>
    %c0_5 = arith.constant 0 : index
    %c0_6 = arith.constant 0 : index
    %3 = vector.load %arg7[%c0_5, %c0_6] : memref<1x8xf32, #tpu.memory_space<vmem>>, vector<1x8xf32>
    %c0_7 = arith.constant 0 : index
    %c0_8 = arith.constant 0 : index
    %4 = vector.load %arg1[%c0_7, %c0_8] : memref<128x2xf32, #tpu.memory_space<vmem>>, vector<128x2xf32>
    %5 = vector.extract_strided_slice %4 {offsets = [0, 0], sizes = [128, 1], strides = [1, 1]} : vector<128x2xf32> to vector<128x1xf32>
    %6 = vector.extract_strided_slice %4 {offsets = [0, 1], sizes = [128, 1], strides = [1, 1]} : vector<128x2xf32> to vector<128x1xf32>
    %7 = vector.extract_strided_slice %0 {offsets = [0, 0], sizes = [1, 128], strides = [1, 1]} : vector<8x128xf32> to vector<1x128xf32>
    %8 = vector.broadcast %5 : vector<128x1xf32> to vector<128x128xf32>
    %9 = vector.broadcast %7 : vector<1x128xf32> to vector<128x128xf32>
    %10 = arith.mulf %8, %9 : vector<128x128xf32>
    %11 = vector.extract_strided_slice %0 {offsets = [1, 0], sizes = [1, 128], strides = [1, 1]} : vector<8x128xf32> to vector<1x128xf32>
    %12 = vector.broadcast %6 : vector<128x1xf32> to vector<128x128xf32>
    %13 = vector.broadcast %11 : vector<1x128xf32> to vector<128x128xf32>
    %14 = arith.mulf %12, %13 : vector<128x128xf32>
    %15 = arith.addf %10, %14 : vector<128x128xf32>
    %16 = vector.broadcast %1 : vector<1x128xf32> to vector<128x128xf32>
    %17 = arith.addf %15, %16 : vector<128x128xf32>
    %18 = math.tanh %17 : vector<128x128xf32>
    %19 = arith.truncf %18 : vector<128x128xf32> to vector<128x128xbf16>
    %c0_9 = arith.constant 0 : index
    %c0_10 = arith.constant 0 : index
    %c0_11 = arith.constant 0 : index
    %20 = vector.load %arg4[%c0_9, %c0_10, %c0_11] : memref<6x128x128xbf16, #tpu.memory_space<vmem>>, vector<1x128x128xbf16>
    %21 = vector.shape_cast %20 : vector<1x128x128xbf16> to vector<128x128xbf16>
    %cst = arith.constant dense<0.000000e+00> : vector<128x128xf32>
    %22 = tpu.matmul %19, %21, %cst {dimension_numbers = #tpu.dot_dimension_numbers<[1], [0], [0], [1], [0, 0, 1, 1], [], []>} : vector<128x128xbf16>, vector<128x128xbf16>, vector<128x128xf32> -> vector<128x128xf32>
    %c0_12 = arith.constant 0 : index
    %c0_13 = arith.constant 0 : index
    %c0_14 = arith.constant 0 : index
    %23 = vector.load %arg5[%c0_12, %c0_13, %c0_14] : memref<6x1x128xf32, #tpu.memory_space<vmem>>, vector<1x1x128xf32>
    %24 = vector.shape_cast %23 : vector<1x1x128xf32> to vector<1x128xf32>
    %25 = vector.broadcast %24 : vector<1x128xf32> to vector<128x128xf32>
    %26 = arith.addf %22, %25 : vector<128x128xf32>
    %27 = math.tanh %26 : vector<128x128xf32>
    %28 = arith.truncf %27 : vector<128x128xf32> to vector<128x128xbf16>
    %c1 = arith.constant 1 : index
    %c0_15 = arith.constant 0 : index
    %c0_16 = arith.constant 0 : index
    %29 = vector.load %arg4[%c1, %c0_15, %c0_16] : memref<6x128x128xbf16, #tpu.memory_space<vmem>>, vector<1x128x128xbf16>
    %30 = vector.shape_cast %29 : vector<1x128x128xbf16> to vector<128x128xbf16>
    %cst_17 = arith.constant dense<0.000000e+00> : vector<128x128xf32>
    %31 = tpu.matmul %28, %30, %cst_17 {dimension_numbers = #tpu.dot_dimension_numbers<[1], [0], [0], [1], [0, 0, 1, 1], [], []>} : vector<128x128xbf16>, vector<128x128xbf16>, vector<128x128xf32> -> vector<128x128xf32>
    %c1_18 = arith.constant 1 : index
    %c0_19 = arith.constant 0 : index
    %c0_20 = arith.constant 0 : index
    %32 = vector.load %arg5[%c1_18, %c0_19, %c0_20] : memref<6x1x128xf32, #tpu.memory_space<vmem>>, vector<1x1x128xf32>
    %33 = vector.shape_cast %32 : vector<1x1x128xf32> to vector<1x128xf32>
    %34 = vector.broadcast %33 : vector<1x128xf32> to vector<128x128xf32>
    %35 = arith.addf %31, %34 : vector<128x128xf32>
    %36 = math.tanh %35 : vector<128x128xf32>
    %37 = arith.truncf %36 : vector<128x128xf32> to vector<128x128xbf16>
    %c2 = arith.constant 2 : index
    %c0_21 = arith.constant 0 : index
    %c0_22 = arith.constant 0 : index
    %38 = vector.load %arg4[%c2, %c0_21, %c0_22] : memref<6x128x128xbf16, #tpu.memory_space<vmem>>, vector<1x128x128xbf16>
    %39 = vector.shape_cast %38 : vector<1x128x128xbf16> to vector<128x128xbf16>
    %cst_23 = arith.constant dense<0.000000e+00> : vector<128x128xf32>
    %40 = tpu.matmul %37, %39, %cst_23 {dimension_numbers = #tpu.dot_dimension_numbers<[1], [0], [0], [1], [0, 0, 1, 1], [], []>} : vector<128x128xbf16>, vector<128x128xbf16>, vector<128x128xf32> -> vector<128x128xf32>
    %c2_24 = arith.constant 2 : index
    %c0_25 = arith.constant 0 : index
    %c0_26 = arith.constant 0 : index
    %41 = vector.load %arg5[%c2_24, %c0_25, %c0_26] : memref<6x1x128xf32, #tpu.memory_space<vmem>>, vector<1x1x128xf32>
    %42 = vector.shape_cast %41 : vector<1x1x128xf32> to vector<1x128xf32>
    %43 = vector.broadcast %42 : vector<1x128xf32> to vector<128x128xf32>
    %44 = arith.addf %40, %43 : vector<128x128xf32>
    %45 = math.tanh %44 : vector<128x128xf32>
    %46 = arith.truncf %45 : vector<128x128xf32> to vector<128x128xbf16>
    %c3 = arith.constant 3 : index
    %c0_27 = arith.constant 0 : index
    %c0_28 = arith.constant 0 : index
    %47 = vector.load %arg4[%c3, %c0_27, %c0_28] : memref<6x128x128xbf16, #tpu.memory_space<vmem>>, vector<1x128x128xbf16>
    %48 = vector.shape_cast %47 : vector<1x128x128xbf16> to vector<128x128xbf16>
    %cst_29 = arith.constant dense<0.000000e+00> : vector<128x128xf32>
    %49 = tpu.matmul %46, %48, %cst_29 {dimension_numbers = #tpu.dot_dimension_numbers<[1], [0], [0], [1], [0, 0, 1, 1], [], []>} : vector<128x128xbf16>, vector<128x128xbf16>, vector<128x128xf32> -> vector<128x128xf32>
    %c3_30 = arith.constant 3 : index
    %c0_31 = arith.constant 0 : index
    %c0_32 = arith.constant 0 : index
    %50 = vector.load %arg5[%c3_30, %c0_31, %c0_32] : memref<6x1x128xf32, #tpu.memory_space<vmem>>, vector<1x1x128xf32>
    %51 = vector.shape_cast %50 : vector<1x1x128xf32> to vector<1x128xf32>
    %52 = vector.broadcast %51 : vector<1x128xf32> to vector<128x128xf32>
    %53 = arith.addf %49, %52 : vector<128x128xf32>
    %54 = math.tanh %53 : vector<128x128xf32>
    %55 = arith.truncf %54 : vector<128x128xf32> to vector<128x128xbf16>
    %c4 = arith.constant 4 : index
    %c0_33 = arith.constant 0 : index
    %c0_34 = arith.constant 0 : index
    %56 = vector.load %arg4[%c4, %c0_33, %c0_34] : memref<6x128x128xbf16, #tpu.memory_space<vmem>>, vector<1x128x128xbf16>
    %57 = vector.shape_cast %56 : vector<1x128x128xbf16> to vector<128x128xbf16>
    %cst_35 = arith.constant dense<0.000000e+00> : vector<128x128xf32>
    %58 = tpu.matmul %55, %57, %cst_35 {dimension_numbers = #tpu.dot_dimension_numbers<[1], [0], [0], [1], [0, 0, 1, 1], [], []>} : vector<128x128xbf16>, vector<128x128xbf16>, vector<128x128xf32> -> vector<128x128xf32>
    %c4_36 = arith.constant 4 : index
    %c0_37 = arith.constant 0 : index
    %c0_38 = arith.constant 0 : index
    %59 = vector.load %arg5[%c4_36, %c0_37, %c0_38] : memref<6x1x128xf32, #tpu.memory_space<vmem>>, vector<1x1x128xf32>
    %60 = vector.shape_cast %59 : vector<1x1x128xf32> to vector<1x128xf32>
    %61 = vector.broadcast %60 : vector<1x128xf32> to vector<128x128xf32>
    %62 = arith.addf %58, %61 : vector<128x128xf32>
    %63 = math.tanh %62 : vector<128x128xf32>
    %64 = arith.truncf %63 : vector<128x128xf32> to vector<128x128xbf16>
    %c5 = arith.constant 5 : index
    %c0_39 = arith.constant 0 : index
    %c0_40 = arith.constant 0 : index
    %65 = vector.load %arg4[%c5, %c0_39, %c0_40] : memref<6x128x128xbf16, #tpu.memory_space<vmem>>, vector<1x128x128xbf16>
    %66 = vector.shape_cast %65 : vector<1x128x128xbf16> to vector<128x128xbf16>
    %cst_41 = arith.constant dense<0.000000e+00> : vector<128x128xf32>
    %67 = tpu.matmul %64, %66, %cst_41 {dimension_numbers = #tpu.dot_dimension_numbers<[1], [0], [0], [1], [0, 0, 1, 1], [], []>} : vector<128x128xbf16>, vector<128x128xbf16>, vector<128x128xf32> -> vector<128x128xf32>
    %c5_42 = arith.constant 5 : index
    %c0_43 = arith.constant 0 : index
    %c0_44 = arith.constant 0 : index
    %68 = vector.load %arg5[%c5_42, %c0_43, %c0_44] : memref<6x1x128xf32, #tpu.memory_space<vmem>>, vector<1x1x128xf32>
    %69 = vector.shape_cast %68 : vector<1x1x128xf32> to vector<1x128xf32>
    %70 = vector.broadcast %69 : vector<1x128xf32> to vector<128x128xf32>
    %71 = arith.addf %67, %70 : vector<128x128xf32>
    %72 = math.tanh %71 : vector<128x128xf32>
    %73 = vector.broadcast %2 : vector<1x128xf32> to vector<128x128xf32>
    %74 = arith.mulf %72, %73 : vector<128x128xf32>
    %cst_45 = arith.constant dense<0.000000e+00> : vector<128xf32>
    %75 = vector.multi_reduction <add>, %74, %cst_45 [1] : vector<128x128xf32> to vector<128xf32>
    %76 = vector.shape_cast %75 : vector<128xf32> to vector<128x1xf32>
    %77 = vector.broadcast %76 : vector<128x1xf32> to vector<128x8xf32>
    %78 = vector.broadcast %3 : vector<1x8xf32> to vector<128x8xf32>
    %79 = arith.addf %77, %78 : vector<128x8xf32>
    %c0_46 = arith.constant 0 : index
    %c0_47 = arith.constant 0 : index
    %80 = vector.load %arg8[%c0_46, %c0_47] : memref<128x8xf32, #tpu.memory_space<vmem>>, vector<128x8xf32>
    tpu.vector_store %arg8[%c0_46, %c0_47], %79 {strides = array<i32>} : memref<128x8xf32, #tpu.memory_space<vmem>>, vector<128x8xf32>,
    return
  }
  func.func @transform_0(%arg0: i32) -> (i32, i32) {
    %c0_i32 = arith.constant 0 : i32
    %c0_i32_0 = arith.constant 0 : i32
    return %arg0, %c0_i32 : i32, i32
  }
  func.func @transform_1(%arg0: i32) -> (i32, i32) {
    %c0_i32 = arith.constant 0 : i32
    %c0_i32_0 = arith.constant 0 : i32
    %c0_i32_1 = arith.constant 0 : i32
    return %c0_i32, %c0_i32_0 : i32, i32
  }
  func.func @transform_2(%arg0: i32) -> (i32, i32) {
    %c0_i32 = arith.constant 0 : i32
    %c0_i32_0 = arith.constant 0 : i32
    %c0_i32_1 = arith.constant 0 : i32
    return %c0_i32, %c0_i32_0 : i32, i32
  }
  func.func @transform_3(%arg0: i32) -> (i32, i32, i32) {
    %c0_i32 = arith.constant 0 : i32
    %c0_i32_0 = arith.constant 0 : i32
    %c0_i32_1 = arith.constant 0 : i32
    %c0_i32_2 = arith.constant 0 : i32
    return %c0_i32, %c0_i32_0, %c0_i32_1 : i32, i32, i32
  }
  func.func @transform_4(%arg0: i32) -> (i32, i32, i32) {
    %c0_i32 = arith.constant 0 : i32
    %c0_i32_0 = arith.constant 0 : i32
    %c0_i32_1 = arith.constant 0 : i32
    %c0_i32_2 = arith.constant 0 : i32
    return %c0_i32, %c0_i32_0, %c0_i32_1 : i32, i32, i32
  }
  func.func @transform_5(%arg0: i32) -> (i32, i32) {
    %c0_i32 = arith.constant 0 : i32
    %c0_i32_0 = arith.constant 0 : i32
    %c0_i32_1 = arith.constant 0 : i32
    return %c0_i32, %c0_i32_0 : i32, i32
  }
  func.func @transform_6(%arg0: i32) -> (i32, i32) {
    %c0_i32 = arith.constant 0 : i32
    %c0_i32_0 = arith.constant 0 : i32
    %c0_i32_1 = arith.constant 0 : i32
    return %c0_i32, %c0_i32_0 : i32, i32
  }
  func.func @transform_7(%arg0: i32) -> (i32, i32) {
    %c0_i32 = arith.constant 0 : i32
    %c0_i32_0 = arith.constant 0 : i32
    return %arg0, %c0_i32 : i32, i32
  }
}

</mosaic_0001>

<bundles_post_ra>
// kernel: tpu_custom_call.1
= control target key start
LH: loop header
LB: loop body
LE: loop exit
PB: predicated region body
PF: predicated region fallthrough
CT: control target
= control target key end

     0   :  { %12 = vsyncpa [#allocation3], 0  ;;  %s2194_s24 = smov 0   ;;  %s2501_s0 = inlined_call_operand.vmem [shape: f32[256,2], index: 0, kind: input, shape index: {}]   ;;  %s2502_s1 = inlined_call_operand.vmem [shape: f32[8,128], index: 1, kind: input, shape index: {}]   ;;  %s2503_s2 = inlined_call_operand.vmem [shape: f32[1,128], index: 2, kind: input, shape index: {}]   ;;  %s2504_s3 = inlined_call_operand.hbm [shape: bf16[6,128,128], index: 3, kind: input, shape index: {}]   ;;  %s2505_s4 = inlined_call_operand.vmem [shape: f32[6,1,128], index: 4, kind: input, shape index: {}]   ;;  %s2506_s5 = inlined_call_operand.vmem [shape: f32[1,128], index: 5, kind: input, shape index: {}]   ;;  %s2507_s6 = inlined_call_operand.vmem [shape: f32[1,8], index: 6, kind: input, shape index: {}]   ;;  %s2508_s7 = inlined_call_operand.vmem [shape: f32[256,8], index: 7, kind: output, shape index: {}]  }
   0x1 LB: > { %s218_s27 = sshll.u32 %s2504_s3, 4  ;;  %s1559_s28 = sadd.s32 4294967295, %s2147_s24   ;;  %s2147_s24 = sphi %s2194_s24, %s18_s24   ;;  %s219_s27 = int_to_ptr.hbm [resolvable:$true] %s218_s27 }
   0x2   : > { %p1561_p0 = scmp.ge.s32.totalorder %s2147_s24, 1  ;;  %p201_p1 = scmp.lt.s32.totalorder %s2147_s24, 3 }
   0x3   : > { %p1841_p2 = scmp.eq.s32.totalorder %s1559_s28, 0  ;;  %s2149_s29 = smov [#allocation2]  }
   0x4   : > { %p202_p3 = pnand %p1561_p0, %p201_p1  ;;  %s220_s30 = sshll.u32 %s2149_s29, 4  ;;  %s221_s30 = int_to_ptr.vmem [resolvable:$true] %s220_s30 }
   0x5   : > { %s2150_s8 = smov 64   ;;  %s2151_s9 = smov 4  }
   0x6   : > { %p1837_p4 = pneg %p202_p3  ;;  %254 = sbr.rel (%p202_p3) target bundleno = 1270 (0x4f6), region = 48 }
   0x8   : > { %p1838_p5 = pnand %p1841_p2, %p1837_p4 }
   0xa   : > { %1840 = dma.hbm_to_vmem [thread:$0]  (!%p1838_p5), %s219_s27, 6144, %s221_s30, [#allocation3], %s2150_s8, %s2150_s8, %s2151_s9  }
   0xb   : > { %2142 = dma.done.wait (%p1841_p2), [#allocation3], 6144  }
   0xc   : > { %2144 = vsyncadd (%p1841_p2), [#allocation3], 4294961152  ;;  %s1566_s10 = sshll.u32 %s1559_s28, 4  ;;  %v2152_v0 = vmov 1   ;;  %v2153_v1 = vmov 0   ;;  %v1776_v15 = vld [vmem:[#allocation2 + $0x38] sm:$0xff] }
   0xd   : > { %1857 = vset.pattern.permute.xlu1 %v2152_v0  ;;  %1856 = vset.pattern.permute.xlu0 %v2153_v1  ;;  %p288_p6 = scmp.lt.s32.totalorder %s1566_s10, 31  ;;  %v1775_v18 = vld [vmem:[#allocation2 + $0x30] sm:$0xff]  ;;  %v1774_v19 = vld [vmem:[#allocation2 + $0x28] sm:$0xff]  ;;  %v1773_v20 = vld [vmem:[#allocation2 + $0x20] sm:$0xff]  ;;  %vm1474_vm0 = vcmask 64512  }
   0xe   : > { %1858 = vset.pattern.permute.xlu2 %v2153_v1  ;;  %624 = vmatpush.bf16.msra.mxu0 %v1776_v15  ;;  %v1772_v22 = vld [vmem:[#allocation2 + $0x18] sm:$0xff]  ;;  %v1771_v23 = vld [vmem:[#allocation2 + $0x10] sm:$0xff]  ;;  %v1770_v25 = vld [vmem:[#allocation2 + $0x8] sm:$0xff] }
   0xf   : > { %s2510_s10 = smov (!%p288_p6, %s1566_s10), 31  ;;  %1817 = vmatpush.bf16.msra.mxu2 %v1776_v15  ;;  %v1769_v26 = vld [vmem:[#allocation2] sm:$0xff] }
  0x10   : > { %s1567_s11 = sshll.u32 %s2510_s10, 3  ;;  %v299_v28 = vld [vmem:[%s2502_s1] sm:$0xff] }
  0x11   : > { %s2216_s14 = scalar_lea.vmem %s2501_s0, %s1567_s11  ;;  %v2252_v29 = vperm.slane %v299_v28, 0  ;;  %v2254_v30 = vperm.slane %v299_v28, 1  ;;  %v2261_v37 = vld [vmem:[%s2503_s2] ss:$0 sm:$0xff]  ;;  %s2463_s17 = scalar_lea.vmem %s2508_s7, %s1567_s11 }
  0x12   : > { %v303_v2 = vld [vmem:[%s2216_s14] sm:$0xff]  ;;  %v305_v3 = vld [vmem:[%s2216_s14 + $0x10] sm:$0xff]  ;;  %v304_v4 = vld [vmem:[%s2216_s14 + $0x8] sm:$0xff]  ;;  %625 = vmatpush.bf16.msra.mxu0 %v1775_v18 }
  0x13   : > { %417 = vperm.xlu1 %1857, %v303_v2   ;;  %321 = vperm.xlu0 %1856, %v303_v2   ;;  %v306_v5 = vld [vmem:[%s2216_s14 + $0x18] sm:$0xff]  ;;  %v307_v6 = vld [vmem:[%s2216_s14 + $0x20] sm:$0xff]  ;;  %v308_v7 = vld [vmem:[%s2216_s14 + $0x28] sm:$0xff] }
  0x14   : > { %331 = vperm.xlu2 %1858, %v305_v3   ;;  %v309_v8 = vld [vmem:[%s2216_s14 + $0x30] sm:$0xff]  ;;  %v310_v9 = vld [vmem:[%s2216_s14 + $0x38] sm:$0xff]  ;;  %v312_v10 = vld [vmem:[%s2216_s14 + $0x48] sm:$0xff]  ;;  %1818 = vmatpush.bf16.msra.mxu2 %v1775_v18 }
  0x15   : > { %v311_v11 = vld [vmem:[%s2216_s14 + $0x40] sm:$0xff]  ;;  %v313_v12 = vld [vmem:[%s2216_s14 + $0x50] sm:$0xff]  ;;  %v316_v13 = vld [vmem:[%s2216_s14 + $0x68] sm:$0xff] }
  0x16   : > { %v314_v14 = vld [vmem:[%s2216_s14 + $0x58] sm:$0xff]  ;;  %v317_v16 = vld [vmem:[%s2216_s14 + $0x70] sm:$0xff]  ;;  %v315_v17 = vld [vmem:[%s2216_s14 + $0x60] sm:$0xff]  ;;  %626 = vmatpush.bf16.msra.mxu0 %v1774_v19 }
  0x17   : > { %v318_v21 = vld [vmem:[%s2216_s14 + $0x78] sm:$0xff] }
  0x18   : > { %1819 = vmatpush.bf16.msra.mxu2 %v1774_v19 }
  0x1a   : > { %627 = vmatpush.bf16.msra.mxu0 %v1773_v20 }
  0x1b   : > { %421 = vperm.xlu1 %1857, %v304_v4   ;;  %326 = vperm.xlu0 %1856, %v304_v4  }
  0x1c   : > { %336 = vperm.xlu2 %1858, %v306_v5   ;;  %1820 = vmatpush.bf16.msra.mxu2 %v1773_v20 }
  0x1e   : > { %628 = vmatpush.bf16.msra.mxu0 %v1772_v22 }
  0x20   : > { %1821 = vmatpush.bf16.msra.mxu2 %v1772_v22 }
  0x22   : > { %629 = vmatpush.bf16.msra.mxu0 %v1771_v23 }
  0x23   : > { %429 = vperm.xlu1 %1857, %v306_v5   ;;  %1859 = vset.pattern.permute.xlu0 %v2152_v0 }
  0x24   : > { %425 = vperm.xlu0 %1859, %v305_v3   ;;  %341 = vperm.xlu2 %1858, %v307_v6  }
  0x25   : > { %1822 = vmatpush.bf16.msra.mxu2 %v1771_v23 }
  0x26   : > { %630 = vmatpush.bf16.msra.mxu0 %v1770_v25 }
  0x29   : > { %1823 = vmatpush.bf16.msra.mxu2 %v1770_v25 }
  0x2a   : > { %631 = vmatpush.bf16.msra.mxu0 %v1769_v26 }
  0x2b   : > { %1860 = vset.pattern.permute.xlu1 %v2153_v1 }
  0x2c   : > { %346 = vperm.xlu1 %1860, %v308_v7   ;;  %437 = vperm.xlu0 %1859, %v308_v7  }
  0x2d   : > { %1861 = vset.pattern.permute.xlu2 %v2152_v0  ;;  %1824 = vmatpush.bf16.msra.mxu2 %v1769_v26 }
  0x2e   : > { %433 = vperm.xlu2 %1861, %v307_v6  }
  0x34   : > { %351 = vperm.xlu1 %1860, %v309_v8   ;;  %441 = vperm.xlu0 %1859, %v309_v8  }
  0x36   : > { %1862 = vset.pattern.permute.xlu2 %v2153_v1 }
  0x37   : > { %356 = vperm.xlu2 %1862, %v310_v9  }
  0x3c   : > { %1863 = vset.pattern.permute.xlu1 %v2152_v0  ;;  %1864 = vset.pattern.permute.xlu0 %v2153_v1 }
  0x3d   : > { %445 = vperm.xlu1 %1863, %v310_v9   ;;  %366 = vperm.xlu0 %1864, %v312_v10  }
  0x3f   : > { %361 = vperm.xlu2 %1862, %v311_v11  }
  0x45   : > { %449 = vperm.xlu1 %1863, %v311_v11   ;;  %1868 = vset.pattern.permute.xlu0 %v2152_v0 }
  0x46   : > { %457 = vperm.xlu0 %1868, %v313_v12  }
  0x47   : > { %1865 = vset.pattern.permute.xlu2 %v2152_v0 }
  0x48   : > { %453 = vperm.xlu2 %1865, %v312_v10  }
  0x4d   : > { %1866 = vset.pattern.permute.xlu1 %v2153_v1 }
  0x4e   : > { %371 = vperm.xlu1 %1866, %v313_v12   ;;  %469 = vperm.xlu0 %1868, %v316_v13  }
  0x50   : > { %1867 = vset.pattern.permute.xlu2 %v2153_v1 }
  0x51   : > { %376 = vperm.xlu2 %1867, %v314_v14  }
  0x56   : > { %1869 = vset.pattern.permute.xlu1 %v2152_v0  ;;  %473 = vperm.xlu0 %1868, %v317_v16  }
  0x57   : > { %461 = vperm.xlu1 %1869, %v314_v14  }
  0x59   : > { %381 = vperm.xlu2 %1867, %v315_v17  }
  0x5f   : > { %1870 = vset.pattern.permute.xlu1 %v2153_v1 }
  0x60   : > { %386 = vperm.xlu1 %1870, %v316_v13  }
  0x61   : > { %1871 = vset.pattern.permute.xlu2 %v2152_v0 }
  0x62   : > { %465 = vperm.xlu2 %1871, %v315_v17  }
  0x68   : > { %391 = vperm.xlu1 %1870, %v317_v16  }
  0x6a   : > { %1872 = vset.pattern.permute.xlu2 %v2153_v1 }
  0x6b   : > { %396 = vperm.xlu2 %1872, %v318_v21  }
  0x6e   : > { %v332_v24 = vpop.permute.xlu2 %331 }
  0x6f   : > { %v402_v51 = vmul.f32 %v2252_v29, %v332_v24 }
  0x70   : > { %1873 = vset.pattern.permute.xlu1 %v2152_v0 }
  0x71   : > { %477 = vperm.xlu1 %1873, %v318_v21  }
  0x76   : > { %v337_v27 = vpop.permute.xlu2 %336 }
  0x77   : > { %v403_v49 = vmul.f32 %v2252_v29, %v337_v27 }
  0x7e   : > { %v342_v35 = vpop.permute.xlu2 %341 }
  0x7f   : > { %v404_v5 = vmul.f32 %v2252_v29, %v342_v35 }
  0x85   : > { %v418_v31 = vpop.permute.xlu1 %417  ;;  %v322_v32 = vpop.permute.xlu0 %321 }
  0x86   : > { %v481_v33 = vmul.f32 %v2254_v30, %v418_v31  ;;  %v400_v34 = vmul.f32 %v2252_v29, %v322_v32 }
  0x88   : > { %v497_v36 = vadd.f32 %v481_v33, %v400_v34  ;;  %v434_v44 = vpop.permute.xlu2 %433 }
  0x89   : > { %v485_v6 = vmul.f32 %v2254_v30, %v434_v44 }
  0x8a   : > { %v516_v42 = vadd.f32 %v2261_v37, %v497_v36 }
  0x8b   : > { %v501_v9 = vadd.f32 %v485_v6, %v404_v5  ;;  %v1784_v5 = vld [vmem:[#allocation2 + $0x78] sm:$0xff] }
  0x8c   : > { %1883 = vtanh.f32 %v516_v42  ;;  %767 = vmatpush.bf16.msra.mxu1 %v1784_v5  ;;  %1825 = vmatpush.bf16.msra.mxu3 %v1784_v5 }
  0x8d   : > { %v422_v38 = vpop.permute.xlu1 %421  ;;  %v327_v39 = vpop.permute.xlu0 %326  ;;  %v520_v14 = vadd.f32 %v2261_v37, %v501_v9 }
  0x8e   : > { %v482_v40 = vmul.f32 %v2254_v30, %v422_v38  ;;  %v401_v41 = vmul.f32 %v2252_v29, %v327_v39 }
  0x90   : > { %v498_v43 = vadd.f32 %v482_v40, %v401_v41 }
  0x91   : > { %v357_v54 = vpop.permute.xlu2 %356 }
  0x92   : > { %v517_v45 = vadd.f32 %v2261_v37, %v498_v43  ;;  %v1884_v52 = vpop.eup %1883  ;;  %v407_v18 = vmul.f32 %v2252_v29, %v357_v54 }
  0x94   : > { %1885 = vtanh.f32 %v517_v45 }
  0x95   : > { %v430_v46 = vpop.permute.xlu1 %429 }
  0x96   : > { %v484_v47 = vmul.f32 %v2254_v30, %v430_v46  ;;  %v426_v48 = vpop.permute.xlu0 %425 }
  0x97   : > { %v483_v50 = vmul.f32 %v2254_v30, %v426_v48 }
  0x98   : > { %v500_v53 = vadd.f32 %v484_v47, %v403_v49 }
  0x99   : > { %v499_v56 = vadd.f32 %v483_v50, %v402_v51  ;;  %v362_v62 = vpop.permute.xlu2 %361 }
  0x9a   : > { %v1886_v55 = vpop.eup %1885  ;;  %v519_v58 = vadd.f32 %v2261_v37, %v500_v53  ;;  %v408_v20 = vmul.f32 %v2252_v29, %v362_v62 }
  0x9b   : > { %v548_v57 = vpack.c.bf16 %v1886_v55, %v1884_v52  ;;  %v518_v59 = vadd.f32 %v2261_v37, %v499_v56 }
  0x9c   : > { %1887 = vtanh.f32 %v519_v58 }
  0x9d   : > { %632 = vmatmul.bf16.vlgmr.msra.gmra.mxu0 %v548_v57  ;;  %1889 = vtanh.f32 %v518_v59 }
  0x9e   : > { %v347_v60 = vpop.permute.xlu1 %346  ;;  %v438_v61 = vpop.permute.xlu0 %437 }
  0x9f   : > { %v405_v63 = vmul.f32 %v2252_v29, %v347_v60  ;;  %v486_v0 = vmul.f32 %v2254_v30, %v438_v61 }
  0xa1   : > { %v502_v7 = vadd.f32 %v486_v0, %v405_v63 }
  0xa2   : > { %v1888_v2 = vpop.eup %1887  ;;  %v454_v10 = vpop.permute.xlu2 %453 }
  0xa3   : > { %v1890_v4 = vpop.eup %1889  ;;  %v521_v11 = vadd.f32 %v2261_v37, %v502_v7  ;;  %v490_v15 = vmul.f32 %v2254_v30, %v454_v10 }
  0xa4   : > { %v549_v8 = vpack.c.bf16 %v1888_v2, %v1890_v4 }
  0xa5   : > { %1891 = vtanh.f32 %v521_v11  ;;  %v1782_v11 = vld [vmem:[#allocation2 + $0x68] sm:$0xff] }
  0xa6   : > { %v352_v1 = vpop.permute.xlu1 %351  ;;  %v442_v3 = vpop.permute.xlu0 %441  ;;  %1893 = vtanh.f32 %v520_v14 }
  0xa7   : > { %v406_v23 = vmul.f32 %v2252_v29, %v352_v1  ;;  %v487_v24 = vmul.f32 %v2254_v30, %v442_v3 }
  0xa9   : > { %v503_v33 = vadd.f32 %v487_v24, %v406_v23 }
  0xab   : > { %v1892_v22 = vpop.eup %1891  ;;  %v377_v35 = vpop.permute.xlu2 %376  ;;  %v522_v38 = vadd.f32 %v2261_v37, %v503_v33  ;;  %v2312_v33 = vld [vmem:[%s2505_s4] ss:$0 sm:$0xff] }
  0xac   : > { %v1894_v27 = vpop.eup %1893  ;;  %v411_v49 = vmul.f32 %v2252_v29, %v377_v35 }
  0xad   : > { %637 = vmatmul.bf16.gmra.mxu0 %v549_v8  ;;  %v550_v32 = vpack.c.bf16 %v1892_v22, %v1894_v27  ;;  %v1783_v8 = vld [vmem:[#allocation2 + $0x70] sm:$0xff] }
  0xae   : > { %768 = vmatpush.bf16.msra.mxu1 %v1783_v8  ;;  %1826 = vmatpush.bf16.msra.mxu3 %v1783_v8 }
  0xaf   : > { %v446_v12 = vpop.permute.xlu1 %445  ;;  %v367_v13 = vpop.permute.xlu0 %366 }
  0xb0   : > { %v409_v16 = vmul.f32 %v2252_v29, %v367_v13  ;;  %v488_v19 = vmul.f32 %v2254_v30, %v446_v12 }
  0xb2   : > { %v506_v17 = vadd.f32 %v490_v15, %v409_v16  ;;  %v504_v28 = vadd.f32 %v488_v19, %v407_v18  ;;  %769 = vmatpush.bf16.msra.mxu1 %v1782_v11  ;;  %1827 = vmatpush.bf16.msra.mxu3 %v1782_v11  ;;  %v1790_v11 = vld [vmem:[#allocation2 + $0xa8] sm:$0xff] }
  0xb3   : > { %v382_v47 = vpop.permute.xlu2 %381 }
  0xb4   : > { %v525_v26 = vadd.f32 %v2261_v37, %v506_v17  ;;  %v523_v36 = vadd.f32 %v2261_v37, %v504_v28  ;;  %v412_v63 = vmul.f32 %v2252_v29, %v382_v47  ;;  %v1780_v28 = vld [vmem:[#allocation2 + $0x58] sm:$0xff] }
  0xb6   : > { %1895 = vtanh.f32 %v525_v26 }
  0xb7   : > { %v450_v21 = vpop.permute.xlu1 %449 }
  0xb8   : > { %v489_v25 = vmul.f32 %v2254_v30, %v450_v21  ;;  %v458_v40 = vpop.permute.xlu0 %457 }
  0xb9   : > { %v491_v43 = vmul.f32 %v2254_v30, %v458_v40 }
  0xba   : > { %v505_v31 = vadd.f32 %v489_v25, %v408_v20 }
  0xbc   : > { %v524_v34 = vadd.f32 %v2261_v37, %v505_v31  ;;  %v1896_v41 = vpop.eup %1895  ;;  %v466_v58 = vpop.permute.xlu2 %465  ;;  %v1778_v31 = vld [vmem:[#allocation2 + $0x48] sm:$0xff] }
  0xbd   : > { %642 = vmatmul.bf16.gmra.mxu0 %v550_v32  ;;  %v493_v0 = vmul.f32 %v2254_v30, %v466_v58  ;;  %v1777_v32 = vld [vmem:[#allocation2 + $0x40] sm:$0xff] }
  0xbe   : > { %1897 = vtanh.f32 %v524_v34 }
  0xbf   : > { %1899 = vtanh.f32 %v523_v36  ;;  %v509_v4 = vadd.f32 %v493_v0, %v412_v63 }
  0xc0   : > { %v372_v39 = vpop.permute.xlu1 %371  ;;  %1901 = vtanh.f32 %v522_v38  ;;  %v470_v57 = vpop.permute.xlu0 %469 }
  0xc1   : > { %v410_v42 = vmul.f32 %v2252_v29, %v372_v39  ;;  %v494_v59 = vmul.f32 %v2254_v30, %v470_v57  ;;  %v528_v9 = vadd.f32 %v2261_v37, %v509_v4 }
  0xc3   : > { %v507_v46 = vadd.f32 %v491_v43, %v410_v42 }
  0xc4   : > { %v1898_v44 = vpop.eup %1897 }
  0xc5   : > { %v552_v45 = vpack.c.bf16 %v1896_v41, %v1898_v44  ;;  %v1900_v48 = vpop.eup %1899  ;;  %v526_v52 = vadd.f32 %v2261_v37, %v507_v46  ;;  %v397_v10 = vpop.permute.xlu2 %396 }
  0xc6   : > { %v1902_v51 = vpop.eup %1901  ;;  %v415_v12 = vmul.f32 %v2252_v29, %v397_v10  ;;  %v1791_v10 = vld [vmem:[#allocation2 + $0xb0] sm:$0xff] }
  0xc7   : > { %652 = vmatmul.bf16.vlgmr.msra.gmra.mxu2 %v552_v45  ;;  %v551_v54 = vpack.c.bf16 %v1900_v48, %v1902_v51  ;;  %1903 = vtanh.f32 %v526_v52 }
  0xc8   : > { %v474_v13 = vpop.permute.xlu0 %473 }
  0xc9   : > { %v462_v50 = vpop.permute.xlu1 %461  ;;  %v495_v19 = vmul.f32 %v2254_v30, %v474_v13 }
  0xca   : > { %v492_v53 = vmul.f32 %v2254_v30, %v462_v50 }
  0xcc   : > { %v508_v55 = vadd.f32 %v492_v53, %v411_v49 }
  0xcd   : > { %647 = vmatmul.bf16.gmra.mxu0 %v551_v54  ;;  %v1904_v62 = vpop.eup %1903 }
  0xce   : > { %v527_v56 = vadd.f32 %v2261_v37, %v508_v55 }
  0xd0   : > { %1905 = vtanh.f32 %v527_v56 }
  0xd2   : > { %v387_v60 = vpop.permute.xlu1 %386 }
  0xd3   : > { %v413_v61 = vmul.f32 %v2252_v29, %v387_v60 }
  0xd5   : > { %v510_v2 = vadd.f32 %v494_v59, %v413_v61 }
  0xd6   : > { %v1906_v1 = vpop.eup %1905 }
  0xd7   : > { %v553_v3 = vpack.c.bf16 %v1906_v1, %v1904_v62  ;;  %v529_v6 = vadd.f32 %v2261_v37, %v510_v2 }
  0xd9   : > { %657 = vmatmul.bf16.gmra.mxu2 %v553_v3  ;;  %1907 = vtanh.f32 %v529_v6  ;;  %v1792_v6 = vld [vmem:[#allocation2 + $0xb8] sm:$0xff] }
  0xda   : > { %v392_v7 = vpop.permute.xlu1 %391  ;;  %1909 = vtanh.f32 %v528_v9  ;;  %910 = vmatpush.bf16.msrb.mxu2 %v1792_v6 }
  0xdb   : > { %v414_v16 = vmul.f32 %v2252_v29, %v392_v7  ;;  %v1781_v29 = vld [vmem:[#allocation2 + $0x60] sm:$0xff] }
  0xdc   : > { %770 = vmatpush.bf16.msra.mxu1 %v1781_v29  ;;  %1828 = vmatpush.bf16.msra.mxu3 %v1781_v29 }
  0xdd   : > { %v511_v22 = vadd.f32 %v495_v19, %v414_v16  ;;  %v1789_v16 = vld [vmem:[#allocation2 + $0xa0] sm:$0xff] }
  0xde   : > { %911 = vmatpush.bf16.msrb.mxu2 %v1791_v10 }
  0xdf   : > { %v1908_v15 = vpop.eup %1907  ;;  %v530_v24 = vadd.f32 %v2261_v37, %v511_v22 }
  0xe0   : > { %v1910_v18 = vpop.eup %1909  ;;  %771 = vmatpush.bf16.msra.mxu1 %v1780_v28  ;;  %1829 = vmatpush.bf16.msra.mxu3 %v1780_v28 }
  0xe1   : > { %v554_v21 = vpack.c.bf16 %v1908_v15, %v1910_v18  ;;  %v1788_v18 = vld [vmem:[#allocation2 + $0x98] sm:$0xff] }
  0xe2   : > { %912 = vmatpush.bf16.msrb.mxu2 %v1790_v11  ;;  %v1798_v11 = vld [vmem:[#allocation2 + $0xe8] sm:$0xff] }
  0xe3   : > { %v478_v14 = vpop.permute.xlu1 %477 }
  0xe4   : > { %v496_v17 = vmul.f32 %v2254_v30, %v478_v14  ;;  %v1779_v30 = vld [vmem:[#allocation2 + $0x50] sm:$0xff] }
  0xe5   : > { %772 = vmatpush.bf16.msra.mxu1 %v1779_v30  ;;  %1830 = vmatpush.bf16.msra.mxu3 %v1779_v30 }
  0xe6   : > { %v512_v20 = vadd.f32 %v496_v17, %v415_v12  ;;  %913 = vmatpush.bf16.msrb.mxu2 %v1789_v16 }
  0xe8   : > { %v531_v23 = vadd.f32 %v2261_v37, %v512_v20 }
  0xe9   : > { %662 = vmatmul.bf16.gmra.mxu2 %v554_v21  ;;  %773 = vmatpush.bf16.msra.mxu1 %v1778_v31  ;;  %v1787_v21 = vld [vmem:[#allocation2 + $0x90] sm:$0xff] }
  0xea   : > { %1911 = vtanh.f32 %v531_v23  ;;  %1831 = vmatpush.bf16.msra.mxu3 %v1778_v31  ;;  %914 = vmatpush.bf16.msrb.mxu2 %v1788_v18 }
  0xeb   : > { %1913 = vtanh.f32 %v530_v24 }
  0xed   : > { %774 = vmatpush.bf16.msra.mxu1 %v1777_v32 }
  0xee   : > { %1832 = vmatpush.bf16.msra.mxu3 %v1777_v32  ;;  %915 = vmatpush.bf16.msrb.mxu2 %v1787_v21  ;;  %v1786_v32 = vld [vmem:[#allocation2 + $0x88] sm:$0xff]  ;;  %v1795_v21 = vld [vmem:[#allocation2 + $0xd0] sm:$0xff] }
  0xf0   : > { %v1912_v25 = vpop.eup %1911 }
  0xf1   : > { %v1914_v26 = vpop.eup %1913 }
  0xf2   : > { %v555_v27 = vpack.c.bf16 %v1912_v25, %v1914_v26  ;;  %916 = vmatpush.bf16.msrb.mxu2 %v1786_v32 }
  0xf9   : > { %667 = vmatmul.bf16.gmra.mxu2 %v555_v27 }
 0x11a   : > { %v633_v37 = vpop.f32.mrf.mxu0 }
 0x11b   : > { %v634_v34 = vadd.f32 %v2312_v33, %v633_v37  ;;  %v1785_v37 = vld [vmem:[#allocation2 + $0x80] sm:$0xff] }
 0x11c   : > { %917 = vmatpush.bf16.msrb.mxu2 %v1785_v37 }
 0x11d   : > { %1915 = vtanh.f32 %v634_v34 }
 0x122   : > { %v635_v35 = vpop.f32.mrf.mxu0 }
 0x123   : > { %v636_v36 = vadd.f32 %v2312_v33, %v635_v35  ;;  %v1916_v38 = vpop.eup %1915  ;;  %v2333_v35 = vld [vmem:[%s2505_s4 + $0x1] ss:$0 sm:$0xff] }
 0x125   : > { %1917 = vtanh.f32 %v636_v36 }
 0x12a   : > { %v638_v39 = vpop.f32.mrf.mxu0 }
 0x12b   : > { %v1918_v40 = vpop.eup %1917  ;;  %v639_v42 = vadd.f32 %v2312_v33, %v638_v39 }
 0x12c   : > { %v689_v41 = vpack.c.bf16 %v1918_v40, %v1916_v38 }
 0x12d   : > { %1919 = vtanh.f32 %v639_v42 }
 0x12e   : > { %775 = vmatmul.bf16.vlgmr.msra.gmra.mxu1 %v689_v41 }
 0x132   : > { %v640_v43 = vpop.f32.mrf.mxu0 }
 0x133   : > { %v641_v44 = vadd.f32 %v2312_v33, %v640_v43  ;;  %v1920_v45 = vpop.eup %1919 }
 0x135   : > { %1921 = vtanh.f32 %v641_v44 }
 0x13a   : > { %v643_v46 = vpop.f32.mrf.mxu0 }
 0x13b   : > { %v1922_v47 = vpop.eup %1921  ;;  %v644_v49 = vadd.f32 %v2312_v33, %v643_v46 }
 0x13c   : > { %v690_v48 = vpack.c.bf16 %v1922_v47, %v1920_v45 }
 0x13d   : > { %1923 = vtanh.f32 %v644_v49 }
 0x13e   : > { %780 = vmatmul.bf16.gmra.mxu1 %v690_v48 }
 0x142   : > { %v645_v50 = vpop.f32.mrf.mxu0 }
 0x143   : > { %v646_v51 = vadd.f32 %v2312_v33, %v645_v50  ;;  %v1924_v52 = vpop.eup %1923 }
 0x145   : > { %1925 = vtanh.f32 %v646_v51 }
 0x14a   : > { %v648_v53 = vpop.f32.mrf.mxu0  ;;  %v653_v54 = vpop.f32.mrf.mxu2 }
 0x14b   : > { %v1926_v55 = vpop.eup %1925  ;;  %v649_v57 = vadd.f32 %v2312_v33, %v648_v53  ;;  %v654_v58 = vadd.f32 %v2312_v33, %v653_v54 }
 0x14c   : > { %v691_v56 = vpack.c.bf16 %v1926_v55, %v1924_v52 }
 0x14d   : > { %1927 = vtanh.f32 %v649_v57 }
 0x14e   : > { %785 = vmatmul.bf16.gmra.mxu1 %v691_v56  ;;  %1929 = vtanh.f32 %v654_v58 }
 0x152   : > { %v650_v59 = vpop.f32.mrf.mxu0  ;;  %v655_v60 = vpop.f32.mrf.mxu2 }
 0x153   : > { %v651_v61 = vadd.f32 %v2312_v33, %v650_v59  ;;  %v656_v62 = vadd.f32 %v2312_v33, %v655_v60  ;;  %v1928_v63 = vpop.eup %1927 }
 0x154   : > { %v1930_v0 = vpop.eup %1929 }
 0x155   : > { %1931 = vtanh.f32 %v651_v61 }
 0x156   : > { %1933 = vtanh.f32 %v656_v62 }
 0x15b   : > { %v1932_v1 = vpop.eup %1931 }
 0x15c   : > { %v1934_v2 = vpop.eup %1933  ;;  %v658_v3 = vpop.f32.mrf.mxu2  ;;  %v692_v4 = vpack.c.bf16 %v1932_v1, %v1928_v63 }
 0x15d   : > { %v693_v5 = vpack.c.bf16 %v1934_v2, %v1930_v0  ;;  %v659_v7 = vadd.f32 %v2312_v33, %v658_v3 }
 0x15e   : > { %790 = vmatmul.bf16.gmra.mxu1 %v692_v4  ;;  %v1800_v4 = vld [vmem:[#allocation2 + $0xf8] sm:$0xff] }
 0x15f   : > { %795 = vmatmul.bf16.vlgmr.msra.gmra.mxu3 %v693_v5  ;;  %1935 = vtanh.f32 %v659_v7 }
 0x160   : > { %1053 = vmatpush.bf16.msrb.mxu3 %v1800_v4  ;;  %v1808_v4 = vld [vmem:[#allocation2 + $0x138] sm:$0xff] }
 0x161   : > { %1196 = vmatpush.bf16.msrb.mxu0 %v1808_v4 }
 0x164   : > { %v660_v8 = vpop.f32.mrf.mxu2 }
 0x165   : > { %v661_v9 = vadd.f32 %v2312_v33, %v660_v8  ;;  %v1936_v12 = vpop.eup %1935 }
 0x167   : > { %1937 = vtanh.f32 %v661_v9  ;;  %v1799_v9 = vld [vmem:[#allocation2 + $0xf0] sm:$0xff] }
 0x168   : > { %1054 = vmatpush.bf16.msrb.mxu3 %v1799_v9  ;;  %v1807_v9 = vld [vmem:[#allocation2 + $0x130] sm:$0xff] }
 0x169   : > { %1197 = vmatpush.bf16.msrb.mxu0 %v1807_v9 }
 0x16c   : > { %v663_v13 = vpop.f32.mrf.mxu2  ;;  %1055 = vmatpush.bf16.msrb.mxu3 %v1798_v11 }
 0x16d   : > { %v1938_v14 = vpop.eup %1937  ;;  %v664_v17 = vadd.f32 %v2312_v33, %v663_v13 }
 0x16e   : > { %v694_v15 = vpack.c.bf16 %v1938_v14, %v1936_v12  ;;  %v1797_v14 = vld [vmem:[#allocation2 + $0xe0] sm:$0xff] }
 0x16f   : > { %1939 = vtanh.f32 %v664_v17 }
 0x170   : > { %800 = vmatmul.bf16.gmra.mxu3 %v694_v15 }
 0x171   : > { %1056 = vmatpush.bf16.msrb.mxu3 %v1797_v14  ;;  %v1805_v14 = vld [vmem:[#allocation2 + $0x120] sm:$0xff] }
 0x174   : > { %v665_v19 = vpop.f32.mrf.mxu2 }
 0x175   : > { %v666_v20 = vadd.f32 %v2312_v33, %v665_v19  ;;  %v1940_v22 = vpop.eup %1939  ;;  %v1796_v19 = vld [vmem:[#allocation2 + $0xd8] sm:$0xff] }
 0x176   : > { %1057 = vmatpush.bf16.msrb.mxu3 %v1796_v19  ;;  %v1804_v19 = vld [vmem:[#allocation2 + $0x118] sm:$0xff] }
 0x177   : > { %1941 = vtanh.f32 %v666_v20 }
 0x17a   : > { %1058 = vmatpush.bf16.msrb.mxu3 %v1795_v21  ;;  %v1803_v21 = vld [vmem:[#allocation2 + $0x110] sm:$0xff] }
 0x17c   : > { %v668_v23 = vpop.f32.mrf.mxu2 }
 0x17d   : > { %v1942_v24 = vpop.eup %1941  ;;  %v669_v26 = vadd.f32 %v2312_v33, %v668_v23 }
 0x17e   : > { %v695_v25 = vpack.c.bf16 %v1942_v24, %v1940_v22 }
 0x17f   : > { %1943 = vtanh.f32 %v669_v26 }
 0x180   : > { %805 = vmatmul.bf16.gmra.mxu3 %v695_v25 }
 0x184   : > { %v670_v27 = vpop.f32.mrf.mxu2 }
 0x185   : > { %v671_v29 = vadd.f32 %v2312_v33, %v670_v27  ;;  %v1944_v28 = vpop.eup %1943 }
 0x187   : > { %1945 = vtanh.f32 %v671_v29 }
 0x18d   : > { %v1946_v30 = vpop.eup %1945 }
 0x18e   : > { %v696_v31 = vpack.c.bf16 %v1946_v30, %v1944_v28  ;;  %v1794_v30 = vld [vmem:[#allocation2 + $0xc8] sm:$0xff] }
 0x18f   : > { %1059 = vmatpush.bf16.msrb.mxu3 %v1794_v30 }
 0x190   : > { %810 = vmatmul.bf16.gmra.mxu3 %v696_v31 }
 0x1ab   : > { %v776_v34 = vpop.f32.mrf.mxu1 }
 0x1ac   : > { %v777_v36 = vadd.f32 %v2333_v35, %v776_v34  ;;  %v1793_v34 = vld [vmem:[#allocation2 + $0xc0] sm:$0xff] }
 0x1ad   : > { %1060 = vmatpush.bf16.msrb.mxu3 %v1793_v34 }
 0x1ae   : > { %1947 = vtanh.f32 %v777_v36 }
 0x1b3   : > { %v778_v38 = vpop.f32.mrf.mxu1 }
 0x1b4   : > { %v779_v33 = vadd.f32 %v2333_v35, %v778_v38  ;;  %v1948_v39 = vpop.eup %1947  ;;  %v2354_v38 = vld [vmem:[%s2505_s4 + $0x2] ss:$0 sm:$0xff] }
 0x1b6   : > { %1949 = vtanh.f32 %v779_v33 }
 0x1bb   : > { %v781_v40 = vpop.f32.mrf.mxu1 }
 0x1bc   : > { %v1950_v41 = vpop.eup %1949  ;;  %v782_v43 = vadd.f32 %v2333_v35, %v781_v40 }
 0x1bd   : > { %v832_v42 = vpack.c.bf16 %v1950_v41, %v1948_v39 }
 0x1be   : > { %1951 = vtanh.f32 %v782_v43 }
 0x1bf   : > { %918 = vmatmul.bf16.vlgmr.msrb.gmra.mxu2 %v832_v42 }
 0x1c3   : > { %v783_v44 = vpop.f32.mrf.mxu1 }
 0x1c4   : > { %v784_v45 = vadd.f32 %v2333_v35, %v783_v44  ;;  %v1952_v46 = vpop.eup %1951 }
 0x1c6   : > { %1953 = vtanh.f32 %v784_v45 }
 0x1cb   : > { %v786_v47 = vpop.f32.mrf.mxu1 }
 0x1cc   : > { %v1954_v48 = vpop.eup %1953  ;;  %v787_v50 = vadd.f32 %v2333_v35, %v786_v47 }
 0x1cd   : > { %v833_v49 = vpack.c.bf16 %v1954_v48, %v1952_v46 }
 0x1ce   : > { %1955 = vtanh.f32 %v787_v50 }
 0x1cf   : > { %923 = vmatmul.bf16.gmra.mxu2 %v833_v49 }
 0x1d3   : > { %v788_v51 = vpop.f32.mrf.mxu1 }
 0x1d4   : > { %v789_v52 = vadd.f32 %v2333_v35, %v788_v51  ;;  %v1956_v53 = vpop.eup %1955 }
 0x1d6   : > { %1957 = vtanh.f32 %v789_v52 }
 0x1db   : > { %v791_v54 = vpop.f32.mrf.mxu1 }
 0x1dc   : > { %v1958_v55 = vpop.eup %1957  ;;  %v792_v57 = vadd.f32 %v2333_v35, %v791_v54 }
 0x1dd   : > { %v834_v56 = vpack.c.bf16 %v1958_v55, %v1956_v53 }
 0x1de   : > { %1959 = vtanh.f32 %v792_v57 }
 0x1df   : > { %928 = vmatmul.bf16.gmra.mxu2 %v834_v56 }
 0x1e2   : > { %v796_v58 = vpop.f32.mrf.mxu3 }
 0x1e3   : > { %v793_v59 = vpop.f32.mrf.mxu1  ;;  %v797_v2 = vadd.f32 %v2333_v35, %v796_v58 }
 0x1e4   : > { %v794_v60 = vadd.f32 %v2333_v35, %v793_v59  ;;  %v1960_v61 = vpop.eup %1959 }
 0x1e6   : > { %1961 = vtanh.f32 %v794_v60 }
 0x1ea   : > { %v798_v62 = vpop.f32.mrf.mxu3 }
 0x1eb   : > { %v799_v1 = vadd.f32 %v2333_v35, %v798_v62 }
 0x1ec   : > { %v1962_v63 = vpop.eup %1961 }
 0x1ed   : > { %v835_v0 = vpack.c.bf16 %v1962_v63, %v1960_v61  ;;  %1963 = vtanh.f32 %v799_v1 }
 0x1ee   : > { %1965 = vtanh.f32 %v797_v2 }
 0x1ef   : > { %933 = vmatmul.bf16.gmra.mxu2 %v835_v0 }
 0x1f3   : > { %v801_v3 = vpop.f32.mrf.mxu3  ;;  %v1964_v5 = vpop.eup %1963 }
 0x1f4   : > { %v1966_v7 = vpop.eup %1965  ;;  %v802_v12 = vadd.f32 %v2333_v35, %v801_v3 }
 0x1f5   : > { %v836_v8 = vpack.c.bf16 %v1964_v5, %v1966_v7 }
 0x1fb   : > { %v803_v6 = vpop.f32.mrf.mxu3 }
 0x1fc   : > { %v804_v10 = vadd.f32 %v2333_v35, %v803_v6 }
 0x1fe   : > { %1967 = vtanh.f32 %v804_v10 }
 0x1ff   : > { %938 = vmatmul.bf16.gmra.mxu2 %v836_v8  ;;  %1969 = vtanh.f32 %v802_v12 }
 0x203   : > { %v806_v13 = vpop.f32.mrf.mxu3 }
 0x204   : > { %v1968_v15 = vpop.eup %1967  ;;  %v807_v22 = vadd.f32 %v2333_v35, %v806_v13  ;;  %v1806_v13 = vld [vmem:[#allocation2 + $0x128] sm:$0xff] }
 0x205   : > { %v1970_v17 = vpop.eup %1969  ;;  %1198 = vmatpush.bf16.msrb.mxu0 %v1806_v13 }
 0x206   : > { %v837_v18 = vpack.c.bf16 %v1968_v15, %v1970_v17 }
 0x209   : > { %1199 = vmatpush.bf16.msrb.mxu0 %v1805_v14 }
 0x20b   : > { %v808_v16 = vpop.f32.mrf.mxu3 }
 0x20c   : > { %v809_v20 = vadd.f32 %v2333_v35, %v808_v16 }
 0x20d   : > { %1200 = vmatpush.bf16.msrb.mxu0 %v1804_v19 }
 0x20e   : > { %1971 = vtanh.f32 %v809_v20 }
 0x20f   : > { %943 = vmatmul.bf16.gmra.mxu2 %v837_v18  ;;  %1973 = vtanh.f32 %v807_v22 }
 0x211   : > { %1201 = vmatpush.bf16.msrb.mxu0 %v1803_v21 }
 0x213   : > { %v811_v23 = vpop.f32.mrf.mxu3 }
 0x214   : > { %v1972_v24 = vpop.eup %1971  ;;  %v812_v28 = vadd.f32 %v2333_v35, %v811_v23 }
 0x215   : > { %v1974_v25 = vpop.eup %1973 }
 0x216   : > { %v838_v27 = vpack.c.bf16 %v1972_v24, %v1974_v25 }
 0x21b   : > { %v813_v26 = vpop.f32.mrf.mxu3 }
 0x21c   : > { %v814_v29 = vadd.f32 %v2333_v35, %v813_v26 }
 0x21e   : > { %1975 = vtanh.f32 %v814_v29 }
 0x21f   : > { %948 = vmatmul.bf16.gmra.mxu2 %v838_v27  ;;  %1977 = vtanh.f32 %v812_v28 }
 0x224   : > { %v1976_v31 = vpop.eup %1975 }
 0x225   : > { %v1978_v32 = vpop.eup %1977 }
 0x226   : > { %v839_v37 = vpack.c.bf16 %v1976_v31, %v1978_v32  ;;  %v1802_v31 = vld [vmem:[#allocation2 + $0x108] sm:$0xff] }
 0x227   : > { %1202 = vmatpush.bf16.msrb.mxu0 %v1802_v31 }
 0x22f   : > { %953 = vmatmul.bf16.gmra.mxu2 %v839_v37 }
 0x242   : > { %v919_v36 = vpop.f32.mrf.mxu2 }
 0x243   : > { %v920_v33 = vadd.f32 %v2354_v38, %v919_v36  ;;  %v1801_v36 = vld [vmem:[#allocation2 + $0x100] sm:$0xff] }
 0x244   : > { %1203 = vmatpush.bf16.msrb.mxu0 %v1801_v36 }
 0x245   : > { %1979 = vtanh.f32 %v920_v33 }
 0x24a   : > { %v921_v39 = vpop.f32.mrf.mxu2 }
 0x24b   : > { %v922_v35 = vadd.f32 %v2354_v38, %v921_v39  ;;  %v1980_v40 = vpop.eup %1979  ;;  %v2375_v39 = vld [vmem:[%s2505_s4 + $0x3] ss:$0 sm:$0xff] }
 0x24d   : > { %1981 = vtanh.f32 %v922_v35 }
 0x252   : > { %v924_v41 = vpop.f32.mrf.mxu2 }
 0x253   : > { %v1982_v42 = vpop.eup %1981  ;;  %v925_v44 = vadd.f32 %v2354_v38, %v924_v41 }
 0x254   : > { %v975_v43 = vpack.c.bf16 %v1982_v42, %v1980_v40 }
 0x255   : > { %1983 = vtanh.f32 %v925_v44 }
 0x256   : > { %1061 = vmatmul.bf16.vlgmr.msrb.gmra.mxu3 %v975_v43 }
 0x25a   : > { %v926_v45 = vpop.f32.mrf.mxu2 }
 0x25b   : > { %v927_v46 = vadd.f32 %v2354_v38, %v926_v45  ;;  %v1984_v47 = vpop.eup %1983 }
 0x25d   : > { %1985 = vtanh.f32 %v927_v46 }
 0x262   : > { %v929_v48 = vpop.f32.mrf.mxu2 }
 0x263   : > { %v1986_v49 = vpop.eup %1985  ;;  %v930_v51 = vadd.f32 %v2354_v38, %v929_v48 }
 0x264   : > { %v976_v50 = vpack.c.bf16 %v1986_v49, %v1984_v47 }
 0x265   : > { %1987 = vtanh.f32 %v930_v51 }
 0x266   : > { %1066 = vmatmul.bf16.gmra.mxu3 %v976_v50 }
 0x26a   : > { %v931_v52 = vpop.f32.mrf.mxu2 }
 0x26b   : > { %v932_v53 = vadd.f32 %v2354_v38, %v931_v52  ;;  %v1988_v54 = vpop.eup %1987 }
 0x26d   : > { %1989 = vtanh.f32 %v932_v53 }
 0x272   : > { %v934_v55 = vpop.f32.mrf.mxu2 }
 0x273   : > { %v1990_v56 = vpop.eup %1989  ;;  %v935_v58 = vadd.f32 %v2354_v38, %v934_v55 }
 0x274   : > { %v977_v57 = vpack.c.bf16 %v1990_v56, %v1988_v54 }
 0x275   : > { %1991 = vtanh.f32 %v935_v58 }
 0x276   : > { %1071 = vmatmul.bf16.gmra.mxu3 %v977_v57 }
 0x27a   : > { %v936_v59 = vpop.f32.mrf.mxu2 }
 0x27b   : > { %v937_v60 = vadd.f32 %v2354_v38, %v936_v59  ;;  %v1992_v61 = vpop.eup %1991 }
 0x27d   : > { %1993 = vtanh.f32 %v937_v60 }
 0x282   : > { %v939_v62 = vpop.f32.mrf.mxu2 }
 0x283   : > { %v1994_v63 = vpop.eup %1993  ;;  %v940_v1 = vadd.f32 %v2354_v38, %v939_v62 }
 0x284   : > { %v978_v0 = vpack.c.bf16 %v1994_v63, %v1992_v61 }
 0x285   : > { %1995 = vtanh.f32 %v940_v1 }
 0x286   : > { %1076 = vmatmul.bf16.gmra.mxu3 %v978_v0 }
 0x28a   : > { %v941_v2 = vpop.f32.mrf.mxu2 }
 0x28b   : > { %v942_v3 = vadd.f32 %v2354_v38, %v941_v2  ;;  %v1996_v5 = vpop.eup %1995  ;;  %v1816_v2 = vld [vmem:[#allocation2 + $0x178] sm:$0xff] }
 0x28c   : > { %1339 = vmatpush.bf16.msrb.mxu1 %v1816_v2 }
 0x28d   : > { %1997 = vtanh.f32 %v942_v3 }
 0x292   : > { %v944_v6 = vpop.f32.mrf.mxu2 }
 0x293   : > { %v1998_v7 = vpop.eup %1997  ;;  %v945_v10 = vadd.f32 %v2354_v38, %v944_v6  ;;  %v1815_v6 = vld [vmem:[#allocation2 + $0x170] sm:$0xff] }
 0x294   : > { %v979_v8 = vpack.c.bf16 %v1998_v7, %v1996_v5  ;;  %1340 = vmatpush.bf16.msrb.mxu1 %v1815_v6 }
 0x295   : > { %1999 = vtanh.f32 %v945_v10 }
 0x296   : > { %1081 = vmatmul.bf16.gmra.mxu3 %v979_v8 }
 0x29a   : > { %v946_v11 = vpop.f32.mrf.mxu2 }
 0x29b   : > { %v947_v12 = vadd.f32 %v2354_v38, %v946_v11  ;;  %v2000_v15 = vpop.eup %1999  ;;  %v1814_v11 = vld [vmem:[#allocation2 + $0x168] sm:$0xff] }
 0x29c   : > { %1341 = vmatpush.bf16.msrb.mxu1 %v1814_v11 }
 0x29d   : > { %2001 = vtanh.f32 %v947_v12 }
 0x2a2   : > { %v949_v16 = vpop.f32.mrf.mxu2 }
 0x2a3   : > { %v2002_v17 = vpop.eup %2001  ;;  %v950_v20 = vadd.f32 %v2354_v38, %v949_v16 }
 0x2a4   : > { %v980_v18 = vpack.c.bf16 %v2002_v17, %v2000_v15  ;;  %v1813_v15 = vld [vmem:[#allocation2 + $0x160] sm:$0xff] }
 0x2a5   : > { %2003 = vtanh.f32 %v950_v20  ;;  %1342 = vmatpush.bf16.msrb.mxu1 %v1813_v15  ;;  %v1812_v20 = vld [vmem:[#allocation2 + $0x158] sm:$0xff] }
 0x2a6   : > { %1086 = vmatmul.bf16.gmra.mxu3 %v980_v18 }
 0x2a9   : > { %1343 = vmatpush.bf16.msrb.mxu1 %v1812_v20 }
 0x2aa   : > { %v951_v22 = vpop.f32.mrf.mxu2 }
 0x2ab   : > { %v952_v23 = vadd.f32 %v2354_v38, %v951_v22  ;;  %v2004_v24 = vpop.eup %2003  ;;  %v1811_v22 = vld [vmem:[#allocation2 + $0x150] sm:$0xff] }
 0x2ad   : > { %2005 = vtanh.f32 %v952_v23  ;;  %1344 = vmatpush.bf16.msrb.mxu1 %v1811_v22 }
 0x2b2   : > { %v954_v25 = vpop.f32.mrf.mxu2 }
 0x2b3   : > { %v2006_v26 = vpop.eup %2005  ;;  %v955_v29 = vadd.f32 %v2354_v38, %v954_v25 }
 0x2b4   : > { %v981_v27 = vpack.c.bf16 %v2006_v26, %v2004_v24 }
 0x2b5   : > { %2007 = vtanh.f32 %v955_v29 }
 0x2b6   : > { %1091 = vmatmul.bf16.gmra.mxu3 %v981_v27 }
 0x2ba   : > { %v956_v28 = vpop.f32.mrf.mxu2 }
 0x2bb   : > { %v957_v30 = vadd.f32 %v2354_v38, %v956_v28  ;;  %v2008_v32 = vpop.eup %2007  ;;  %v1810_v28 = vld [vmem:[#allocation2 + $0x148] sm:$0xff] }
 0x2bc   : > { %1345 = vmatpush.bf16.msrb.mxu1 %v1810_v28 }
 0x2bd   : > { %2009 = vtanh.f32 %v957_v30 }
 0x2c3   : > { %v2010_v37 = vpop.eup %2009 }
 0x2c4   : > { %v982_v34 = vpack.c.bf16 %v2010_v37, %v2008_v32  ;;  %v1809_v37 = vld [vmem:[#allocation2 + $0x140] sm:$0xff] }
 0x2c5   : > { %1346 = vmatpush.bf16.msrb.mxu1 %v1809_v37  ;;  %v2423_v37 = vld [vmem:[%s2506_s5] ss:$0 sm:$0xff] }
 0x2c6   : > { %1096 = vmatmul.bf16.gmra.mxu3 %v982_v34 }
 0x2d9   : > { %v1062_v33 = vpop.f32.mrf.mxu3 }
 0x2da   : > { %v1063_v35 = vadd.f32 %v2375_v39, %v1062_v33 }
 0x2dc   : > { %2011 = vtanh.f32 %v1063_v35 }
 0x2e1   : > { %v1064_v40 = vpop.f32.mrf.mxu3 }
 0x2e2   : > { %v1065_v38 = vadd.f32 %v2375_v39, %v1064_v40  ;;  %v2012_v41 = vpop.eup %2011  ;;  %v2396_v40 = vld [vmem:[%s2505_s4 + $0x4] ss:$0 sm:$0xff] }
 0x2e4   : > { %2013 = vtanh.f32 %v1065_v38 }
 0x2e9   : > { %v1067_v42 = vpop.f32.mrf.mxu3 }
 0x2ea   : > { %v2014_v43 = vpop.eup %2013  ;;  %v1068_v45 = vadd.f32 %v2375_v39, %v1067_v42 }
 0x2eb   : > { %v1118_v44 = vpack.c.bf16 %v2014_v43, %v2012_v41 }
 0x2ec   : > { %2015 = vtanh.f32 %v1068_v45 }
 0x2ed   : > { %1204 = vmatmul.bf16.vlgmr.msrb.gmra.mxu0 %v1118_v44 }
 0x2f1   : > { %v1069_v46 = vpop.f32.mrf.mxu3 }
 0x2f2   : > { %v1070_v47 = vadd.f32 %v2375_v39, %v1069_v46  ;;  %v2016_v48 = vpop.eup %2015 }
 0x2f4   : > { %2017 = vtanh.f32 %v1070_v47 }
 0x2f9   : > { %v1072_v49 = vpop.f32.mrf.mxu3 }
 0x2fa   : > { %v2018_v50 = vpop.eup %2017  ;;  %v1073_v52 = vadd.f32 %v2375_v39, %v1072_v49 }
 0x2fb   : > { %v1119_v51 = vpack.c.bf16 %v2018_v50, %v2016_v48 }
 0x2fc   : > { %2019 = vtanh.f32 %v1073_v52 }
 0x2fd   : > { %1209 = vmatmul.bf16.gmra.mxu0 %v1119_v51 }
 0x301   : > { %v1074_v53 = vpop.f32.mrf.mxu3 }
 0x302   : > { %v1075_v54 = vadd.f32 %v2375_v39, %v1074_v53  ;;  %v2020_v55 = vpop.eup %2019 }
 0x304   : > { %2021 = vtanh.f32 %v1075_v54 }
 0x309   : > { %v1077_v56 = vpop.f32.mrf.mxu3 }
 0x30a   : > { %v2022_v57 = vpop.eup %2021  ;;  %v1078_v59 = vadd.f32 %v2375_v39, %v1077_v56 }
 0x30b   : > { %v1120_v58 = vpack.c.bf16 %v2022_v57, %v2020_v55 }
 0x30c   : > { %2023 = vtanh.f32 %v1078_v59 }
 0x30d   : > { %1214 = vmatmul.bf16.gmra.mxu0 %v1120_v58 }
 0x311   : > { %v1079_v60 = vpop.f32.mrf.mxu3 }
 0x312   : > { %v1080_v61 = vadd.f32 %v2375_v39, %v1079_v60  ;;  %v2024_v62 = vpop.eup %2023 }
 0x314   : > { %2025 = vtanh.f32 %v1080_v61 }
 0x319   : > { %v1082_v63 = vpop.f32.mrf.mxu3 }
 0x31a   : > { %v2026_v0 = vpop.eup %2025  ;;  %v1083_v3 = vadd.f32 %v2375_v39, %v1082_v63 }
 0x31b   : > { %v1121_v1 = vpack.c.bf16 %v2026_v0, %v2024_v62 }
 0x31c   : > { %2027 = vtanh.f32 %v1083_v3 }
 0x31d   : > { %1219 = vmatmul.bf16.gmra.mxu0 %v1121_v1 }
 0x321   : > { %v1084_v4 = vpop.f32.mrf.mxu3 }
 0x322   : > { %v1085_v5 = vadd.f32 %v2375_v39, %v1084_v4  ;;  %v2028_v7 = vpop.eup %2027 }
 0x324   : > { %2029 = vtanh.f32 %v1085_v5 }
 0x329   : > { %v1087_v8 = vpop.f32.mrf.mxu3 }
 0x32a   : > { %v2030_v9 = vpop.eup %2029  ;;  %v1088_v12 = vadd.f32 %v2375_v39, %v1087_v8 }
 0x32b   : > { %v1122_v10 = vpack.c.bf16 %v2030_v9, %v2028_v7 }
 0x32c   : > { %2031 = vtanh.f32 %v1088_v12 }
 0x32d   : > { %1224 = vmatmul.bf16.gmra.mxu0 %v1122_v10 }
 0x331   : > { %v1089_v13 = vpop.f32.mrf.mxu3 }
 0x332   : > { %v1090_v14 = vadd.f32 %v2375_v39, %v1089_v13  ;;  %v2032_v16 = vpop.eup %2031 }
 0x334   : > { %2033 = vtanh.f32 %v1090_v14 }
 0x339   : > { %v1092_v17 = vpop.f32.mrf.mxu3 }
 0x33a   : > { %v2034_v18 = vpop.eup %2033  ;;  %v1093_v21 = vadd.f32 %v2375_v39, %v1092_v17 }
 0x33b   : > { %v1123_v19 = vpack.c.bf16 %v2034_v18, %v2032_v16 }
 0x33c   : > { %2035 = vtanh.f32 %v1093_v21 }
 0x33d   : > { %1229 = vmatmul.bf16.gmra.mxu0 %v1123_v19 }
 0x341   : > { %v1094_v23 = vpop.f32.mrf.mxu3 }
 0x342   : > { %v1095_v24 = vadd.f32 %v2375_v39, %v1094_v23  ;;  %v2036_v25 = vpop.eup %2035 }
 0x344   : > { %2037 = vtanh.f32 %v1095_v24 }
 0x349   : > { %v1097_v26 = vpop.f32.mrf.mxu3 }
 0x34a   : > { %v2038_v27 = vpop.eup %2037  ;;  %v1098_v30 = vadd.f32 %v2375_v39, %v1097_v26 }
 0x34b   : > { %v1124_v29 = vpack.c.bf16 %v2038_v27, %v2036_v25 }
 0x34c   : > { %2039 = vtanh.f32 %v1098_v30  ;;  %v2417_v30 = vld [vmem:[%s2505_s4 + $0x5] ss:$0 sm:$0xff] }
 0x34d   : > { %1234 = vmatmul.bf16.gmra.mxu0 %v1124_v29 }
 0x351   : > { %v1099_v31 = vpop.f32.mrf.mxu3 }
 0x352   : > { %v1100_v32 = vadd.f32 %v2375_v39, %v1099_v31  ;;  %v2040_v34 = vpop.eup %2039 }
 0x354   : > { %2041 = vtanh.f32 %v1100_v32 }
 0x35a   : > { %v2042_v36 = vpop.eup %2041 }
 0x35b   : > { %v1125_v33 = vpack.c.bf16 %v2042_v36, %v2040_v34 }
 0x35d   : > { %1239 = vmatmul.bf16.gmra.mxu0 %v1125_v33 }
 0x36a   : > { %v1205_v35 = vpop.f32.mrf.mxu0 }
 0x36b   : > { %v1206_v38 = vadd.f32 %v2396_v40, %v1205_v35 }
 0x36d   : > { %2043 = vtanh.f32 %v1206_v38 }
 0x372   : > { %v1207_v41 = vpop.f32.mrf.mxu0 }
 0x373   : > { %v1208_v42 = vadd.f32 %v2396_v40, %v1207_v41  ;;  %v2044_v39 = vpop.eup %2043 }
 0x375   : > { %2045 = vtanh.f32 %v1208_v42 }
 0x37a   : > { %v1210_v43 = vpop.f32.mrf.mxu0 }
 0x37b   : > { %v2046_v44 = vpop.eup %2045  ;;  %v1211_v46 = vadd.f32 %v2396_v40, %v1210_v43 }
 0x37c   : > { %v1261_v45 = vpack.c.bf16 %v2046_v44, %v2044_v39 }
 0x37d   : > { %2047 = vtanh.f32 %v1211_v46 }
 0x37e   : > { %1347 = vmatmul.bf16.vlgmr.msrb.gmra.mxu1 %v1261_v45 }
 0x382   : > { %v1212_v47 = vpop.f32.mrf.mxu0 }
 0x383   : > { %v1213_v48 = vadd.f32 %v2396_v40, %v1212_v47  ;;  %v2048_v49 = vpop.eup %2047 }
 0x385   : > { %2049 = vtanh.f32 %v1213_v48 }
 0x38a   : > { %v1215_v50 = vpop.f32.mrf.mxu0 }
 0x38b   : > { %v2050_v51 = vpop.eup %2049  ;;  %v1216_v53 = vadd.f32 %v2396_v40, %v1215_v50 }
 0x38c   : > { %v1262_v52 = vpack.c.bf16 %v2050_v51, %v2048_v49 }
 0x38d   : > { %2051 = vtanh.f32 %v1216_v53 }
 0x38e   : > { %1352 = vmatmul.bf16.gmra.mxu1 %v1262_v52 }
 0x392   : > { %v1217_v54 = vpop.f32.mrf.mxu0 }
 0x393   : > { %v1218_v55 = vadd.f32 %v2396_v40, %v1217_v54  ;;  %v2052_v56 = vpop.eup %2051 }
 0x395   : > { %2053 = vtanh.f32 %v1218_v55 }
 0x39a   : > { %v1220_v57 = vpop.f32.mrf.mxu0 }
 0x39b   : > { %v2054_v58 = vpop.eup %2053  ;;  %v1221_v60 = vadd.f32 %v2396_v40, %v1220_v57 }
 0x39c   : > { %v1263_v59 = vpack.c.bf16 %v2054_v58, %v2052_v56 }
 0x39d   : > { %2055 = vtanh.f32 %v1221_v60 }
 0x39e   : > { %1357 = vmatmul.bf16.gmra.mxu1 %v1263_v59 }
 0x3a2   : > { %v1222_v61 = vpop.f32.mrf.mxu0 }
 0x3a3   : > { %v1223_v62 = vadd.f32 %v2396_v40, %v1222_v61  ;;  %v2056_v63 = vpop.eup %2055 }
 0x3a5   : > { %2057 = vtanh.f32 %v1223_v62 }
 0x3aa   : > { %v1225_v0 = vpop.f32.mrf.mxu0 }
 0x3ab   : > { %v2058_v1 = vpop.eup %2057  ;;  %v1226_v3 = vadd.f32 %v2396_v40, %v1225_v0 }
 0x3ac   : > { %v1264_v2 = vpack.c.bf16 %v2058_v1, %v2056_v63 }
 0x3ad   : > { %2059 = vtanh.f32 %v1226_v3 }
 0x3ae   : > { %1362 = vmatmul.bf16.gmra.mxu1 %v1264_v2 }
 0x3b2   : > { %v1227_v4 = vpop.f32.mrf.mxu0 }
 0x3b3   : > { %v1228_v5 = vadd.f32 %v2396_v40, %v1227_v4  ;;  %v2060_v6 = vpop.eup %2059 }
 0x3b5   : > { %2061 = vtanh.f32 %v1228_v5 }
 0x3ba   : > { %v1230_v7 = vpop.f32.mrf.mxu0 }
 0x3bb   : > { %v2062_v8 = vpop.eup %2061  ;;  %v1231_v10 = vadd.f32 %v2396_v40, %v1230_v7 }
 0x3bc   : > { %v1265_v9 = vpack.c.bf16 %v2062_v8, %v2060_v6 }
 0x3bd   : > { %2063 = vtanh.f32 %v1231_v10 }
 0x3be   : > { %1367 = vmatmul.bf16.gmra.mxu1 %v1265_v9 }
 0x3c2   : > { %v1232_v11 = vpop.f32.mrf.mxu0 }
 0x3c3   : > { %v1233_v12 = vadd.f32 %v2396_v40, %v1232_v11  ;;  %v2064_v13 = vpop.eup %2063 }
 0x3c5   : > { %2065 = vtanh.f32 %v1233_v12 }
 0x3ca   : > { %v1235_v14 = vpop.f32.mrf.mxu0 }
 0x3cb   : > { %v2066_v15 = vpop.eup %2065  ;;  %v1236_v17 = vadd.f32 %v2396_v40, %v1235_v14 }
 0x3cc   : > { %v1266_v16 = vpack.c.bf16 %v2066_v15, %v2064_v13 }
 0x3cd   : > { %2067 = vtanh.f32 %v1236_v17 }
 0x3ce   : > { %1372 = vmatmul.bf16.gmra.mxu1 %v1266_v16 }
 0x3d2   : > { %v1237_v18 = vpop.f32.mrf.mxu0 }
 0x3d3   : > { %v1238_v19 = vadd.f32 %v2396_v40, %v1237_v18  ;;  %v2068_v20 = vpop.eup %2067 }
 0x3d5   : > { %2069 = vtanh.f32 %v1238_v19 }
 0x3da   : > { %v1240_v21 = vpop.f32.mrf.mxu0 }
 0x3db   : > { %v2070_v22 = vpop.eup %2069  ;;  %v1241_v24 = vadd.f32 %v2396_v40, %v1240_v21 }
 0x3dc   : > { %v1267_v23 = vpack.c.bf16 %v2070_v22, %v2068_v20 }
 0x3dd   : > { %2071 = vtanh.f32 %v1241_v24 }
 0x3de   : > { %1377 = vmatmul.bf16.gmra.mxu1 %v1267_v23 }
 0x3e2   : > { %v1242_v25 = vpop.f32.mrf.mxu0 }
 0x3e3   : > { %v1243_v26 = vadd.f32 %v2396_v40, %v1242_v25  ;;  %v2072_v27 = vpop.eup %2071 }
 0x3e5   : > { %2073 = vtanh.f32 %v1243_v26 }
 0x3eb   : > { %v2074_v29 = vpop.eup %2073 }
 0x3ec   : > { %v1268_v28 = vpack.c.bf16 %v2074_v29, %v2072_v27 }
 0x3ee   : > { %1382 = vmatmul.bf16.gmra.mxu1 %v1268_v28 }
 0x3fb   : > { %v1348_v31 = vpop.f32.mrf.mxu1 }
 0x3fc   : > { %v1349_v32 = vadd.f32 %v2417_v30, %v1348_v31  ;;  %v1882_v31 = vld [vmem:[%s2507_s6] ss:$0 sm:$0xff] }
 0x3fe   : > { %2075 = vtanh.f32 %v1349_v32 }
 0x403   : > { %v1350_v34 = vpop.f32.mrf.mxu1 }
 0x404   : > { %v2076_v36 = vpop.eup %2075  ;;  %v1351_v33 = vadd.f32 %v2417_v30, %v1350_v34 }
 0x405   : > { %v1407_v35 = vmul.f32 %v2076_v36, %v2423_v37 }
 0x406   : > { %2077 = vtanh.f32 %v1351_v33 }
 0x407   : > { %1423 = vadd.xlane.f32.xlu2 %v1407_v35 }
 0x40b   : > { %v1353_v40 = vpop.f32.mrf.mxu1 }
 0x40c   : > { %v2078_v38 = vpop.eup %2077  ;;  %v1354_v41 = vadd.f32 %v2417_v30, %v1353_v40 }
 0x40d   : > { %v1408_v42 = vmul.f32 %v2078_v38, %v2423_v37 }
 0x40e   : > { %2079 = vtanh.f32 %v1354_v41 }
 0x40f   : > { %1425 = vadd.xlane.f32.xlu0 %v1408_v42 }
 0x413   : > { %v1355_v39 = vpop.f32.mrf.mxu1 }
 0x414   : > { %v2080_v43 = vpop.eup %2079  ;;  %v1356_v44 = vadd.f32 %v2417_v30, %v1355_v39 }
 0x415   : > { %v1409_v45 = vmul.f32 %v2080_v43, %v2423_v37 }
 0x416   : > { %2081 = vtanh.f32 %v1356_v44 }
 0x417   : > { %1427 = vadd.xlane.f32.xlu1 %v1409_v45 }
 0x41b   : > { %v1358_v46 = vpop.f32.mrf.mxu1 }
 0x41c   : > { %v2082_v47 = vpop.eup %2081  ;;  %v1359_v48 = vadd.f32 %v2417_v30, %v1358_v46 }
 0x41d   : > { %v1410_v49 = vmul.f32 %v2082_v47, %v2423_v37 }
 0x41e   : > { %2083 = vtanh.f32 %v1359_v48 }
 0x41f   : > { %1429 = vadd.xlane.f32.xlu2 %v1410_v49 }
 0x423   : > { %v1360_v50 = vpop.f32.mrf.mxu1 }
 0x424   : > { %v2084_v51 = vpop.eup %2083  ;;  %v1361_v52 = vadd.f32 %v2417_v30, %v1360_v50 }
 0x425   : > { %v1411_v53 = vmul.f32 %v2084_v51, %v2423_v37 }
 0x426   : > { %2085 = vtanh.f32 %v1361_v52 }
 0x427   : > { %1431 = vadd.xlane.f32.xlu2 %v1411_v53 }
 0x42b   : > { %v1363_v54 = vpop.f32.mrf.mxu1 }
 0x42c   : > { %v2086_v55 = vpop.eup %2085  ;;  %v1364_v56 = vadd.f32 %v2417_v30, %v1363_v54 }
 0x42d   : > { %v1412_v57 = vmul.f32 %v2086_v55, %v2423_v37 }
 0x42e   : > { %2087 = vtanh.f32 %v1364_v56 }
 0x42f   : > { %1433 = vadd.xlane.f32.xlu0 %v1412_v57 }
 0x433   : > { %v1365_v58 = vpop.f32.mrf.mxu1 }
 0x434   : > { %v2088_v59 = vpop.eup %2087  ;;  %v1366_v60 = vadd.f32 %v2417_v30, %v1365_v58 }
 0x435   : > { %v1413_v61 = vmul.f32 %v2088_v59, %v2423_v37 }
 0x436   : > { %2089 = vtanh.f32 %v1366_v60 }
 0x437   : > { %1435 = vadd.xlane.f32.xlu1 %v1413_v61 }
 0x43b   : > { %v1368_v62 = vpop.f32.mrf.mxu1 }
 0x43c   : > { %v2090_v63 = vpop.eup %2089  ;;  %v1369_v0 = vadd.f32 %v2417_v30, %v1368_v62 }
 0x43d   : > { %v1414_v1 = vmul.f32 %v2090_v63, %v2423_v37 }
 0x43e   : > { %2091 = vtanh.f32 %v1369_v0 }
 0x43f   : > { %1437 = vadd.xlane.f32.xlu2 %v1414_v1 }
 0x443   : > { %v1370_v2 = vpop.f32.mrf.mxu1 }
 0x444   : > { %v2092_v3 = vpop.eup %2091  ;;  %v1371_v4 = vadd.f32 %v2417_v30, %v1370_v2 }
 0x445   : > { %v1415_v5 = vmul.f32 %v2092_v3, %v2423_v37 }
 0x446   : > { %2093 = vtanh.f32 %v1371_v4 }
 0x447   : > { %1439 = vadd.xlane.f32.xlu0 %v1415_v5 }
 0x44b   : > { %v1373_v6 = vpop.f32.mrf.mxu1 }
 0x44c   : > { %v2094_v7 = vpop.eup %2093  ;;  %v1374_v8 = vadd.f32 %v2417_v30, %v1373_v6 }
 0x44d   : > { %v1416_v9 = vmul.f32 %v2094_v7, %v2423_v37 }
 0x44e   : > { %2095 = vtanh.f32 %v1374_v8 }
 0x44f   : > { %1441 = vadd.xlane.f32.xlu1 %v1416_v9 }
 0x453   : > { %v1375_v10 = vpop.f32.mrf.mxu1 }
 0x454   : > { %v2096_v11 = vpop.eup %2095  ;;  %v1376_v12 = vadd.f32 %v2417_v30, %v1375_v10 }
 0x455   : > { %v1417_v13 = vmul.f32 %v2096_v11, %v2423_v37 }
 0x456   : > { %2097 = vtanh.f32 %v1376_v12 }
 0x457   : > { %1443 = vadd.xlane.f32.xlu2 %v1417_v13 }
 0x45b   : > { %v1378_v14 = vpop.f32.mrf.mxu1 }
 0x45c   : > { %v2098_v15 = vpop.eup %2097  ;;  %v1379_v16 = vadd.f32 %v2417_v30, %v1378_v14 }
 0x45d   : > { %v1418_v17 = vmul.f32 %v2098_v15, %v2423_v37 }
 0x45e   : > { %2099 = vtanh.f32 %v1379_v16 }
 0x45f   : > { %1445 = vadd.xlane.f32.xlu0 %v1418_v17 }
 0x463   : > { %v1380_v18 = vpop.f32.mrf.mxu1 }
 0x464   : > { %v2100_v19 = vpop.eup %2099  ;;  %v1381_v20 = vadd.f32 %v2417_v30, %v1380_v18 }
 0x465   : > { %v1419_v21 = vmul.f32 %v2100_v19, %v2423_v37 }
 0x466   : > { %2101 = vtanh.f32 %v1381_v20 }
 0x467   : > { %1447 = vadd.xlane.f32.xlu1 %v1419_v21 }
 0x46b   : > { %v1383_v22 = vpop.f32.mrf.mxu1 }
 0x46c   : > { %v2102_v23 = vpop.eup %2101  ;;  %v1384_v24 = vadd.f32 %v2417_v30, %v1383_v22 }
 0x46d   : > { %v1420_v25 = vmul.f32 %v2102_v23, %v2423_v37 }
 0x46e   : > { %2103 = vtanh.f32 %v1384_v24 }
 0x46f   : > { %1449 = vadd.xlane.f32.xlu2 %v1420_v25 }
 0x473   : > { %v1385_v26 = vpop.f32.mrf.mxu1 }
 0x474   : > { %v2104_v27 = vpop.eup %2103  ;;  %v1386_v29 = vadd.f32 %v2417_v30, %v1385_v26 }
 0x475   : > { %v1421_v28 = vmul.f32 %v2104_v27, %v2423_v37 }
 0x476   : > { %2105 = vtanh.f32 %v1386_v29 }
 0x477   : > { %1451 = vadd.xlane.f32.xlu0 %v1421_v28 }
 0x47a   : > { %v1424_v30 = vpop.xlane.xlu2 %1423 }
 0x47b   : > { %v1458_v32 = vadd.f32 %v1882_v31, %v1424_v30 }
 0x47c   : > { %v2106_v34 = vpop.eup %2105 }
 0x47d   : > { %1475 = vst.msk [vmem:[%s2463_s17] sm:$0xff] %vm1474_vm0, %v1458_v32  ;;  %v1422_v36 = vmul.f32 %v2106_v34, %v2423_v37 }
 0x47f   : > { %1453 = vadd.xlane.f32.xlu1 %v1422_v36 }
 0x482   : > { %v1426_v33 = vpop.xlane.xlu0 %1425 }
 0x483   : > { %v1459_v35 = vadd.f32 %v1882_v31, %v1426_v33 }
 0x485   : > { %1476 = vst.msk [vmem:[%s2463_s17 + $0x8] sm:$0xff] %vm1474_vm0, %v1459_v35 }
 0x48a   : > { %v1428_v40 = vpop.xlane.xlu1 %1427 }
 0x48b   : > { %v1460_v38 = vadd.f32 %v1882_v31, %v1428_v40 }
 0x48d   : > { %1477 = vst.msk [vmem:[%s2463_s17 + $0x10] sm:$0xff] %vm1474_vm0, %v1460_v38 }
 0x492   : > { %v1430_v41 = vpop.xlane.xlu2 %1429 }
 0x493   : > { %v1461_v42 = vadd.f32 %v1882_v31, %v1430_v41 }
 0x495   : > { %1478 = vst.msk [vmem:[%s2463_s17 + $0x18] sm:$0xff] %vm1474_vm0, %v1461_v42 }
 0x49a   : > { %v1432_v39 = vpop.xlane.xlu2 %1431 }
 0x49b   : > { %v1462_v43 = vadd.f32 %v1882_v31, %v1432_v39 }
 0x49d   : > { %1479 = vst.msk [vmem:[%s2463_s17 + $0x20] sm:$0xff] %vm1474_vm0, %v1462_v43 }
 0x4a2   : > { %v1434_v37 = vpop.xlane.xlu0 %1433 }
 0x4a3   : > { %v1463_v44 = vadd.f32 %v1882_v31, %v1434_v37 }
 0x4a5   : > { %1480 = vst.msk [vmem:[%s2463_s17 + $0x28] sm:$0xff] %vm1474_vm0, %v1463_v44 }
 0x4aa   : > { %v1436_v45 = vpop.xlane.xlu1 %1435 }
 0x4ab   : > { %v1464_v46 = vadd.f32 %v1882_v31, %v1436_v45 }
 0x4ad   : > { %1481 = vst.msk [vmem:[%s2463_s17 + $0x30] sm:$0xff] %vm1474_vm0, %v1464_v46 }
 0x4b2   : > { %v1438_v47 = vpop.xlane.xlu2 %1437 }
 0x4b3   : > { %v1465_v48 = vadd.f32 %v1882_v31, %v1438_v47 }
 0x4b5   : > { %1482 = vst.msk [vmem:[%s2463_s17 + $0x38] sm:$0xff] %vm1474_vm0, %v1465_v48 }
 0x4ba   : > { %v1440_v49 = vpop.xlane.xlu0 %1439 }
 0x4bb   : > { %v1466_v50 = vadd.f32 %v1882_v31, %v1440_v49 }
 0x4bd   : > { %1483 = vst.msk [vmem:[%s2463_s17 + $0x40] sm:$0xff] %vm1474_vm0, %v1466_v50 }
 0x4c2   : > { %v1442_v51 = vpop.xlane.xlu1 %1441 }
 0x4c3   : > { %v1467_v52 = vadd.f32 %v1882_v31, %v1442_v51 }
 0x4c5   : > { %1484 = vst.msk [vmem:[%s2463_s17 + $0x48] sm:$0xff] %vm1474_vm0, %v1467_v52 }
 0x4ca   : > { %v1444_v53 = vpop.xlane.xlu2 %1443 }
 0x4cb   : > { %v1468_v54 = vadd.f32 %v1882_v31, %v1444_v53 }
 0x4cd   : > { %1485 = vst.msk [vmem:[%s2463_s17 + $0x50] sm:$0xff] %vm1474_vm0, %v1468_v54 }
 0x4d2   : > { %v1446_v55 = vpop.xlane.xlu0 %1445 }
 0x4d3   : > { %v1469_v56 = vadd.f32 %v1882_v31, %v1446_v55 }
 0x4d5   : > { %1486 = vst.msk [vmem:[%s2463_s17 + $0x58] sm:$0xff] %vm1474_vm0, %v1469_v56 }
 0x4da   : > { %v1448_v57 = vpop.xlane.xlu1 %1447 }
 0x4db   : > { %v1470_v58 = vadd.f32 %v1882_v31, %v1448_v57 }
 0x4dd   : > { %1487 = vst.msk [vmem:[%s2463_s17 + $0x60] sm:$0xff] %vm1474_vm0, %v1470_v58 }
 0x4e2   : > { %v1450_v59 = vpop.xlane.xlu2 %1449 }
 0x4e3   : > { %v1471_v60 = vadd.f32 %v1882_v31, %v1450_v59 }
 0x4e5   : > { %1488 = vst.msk [vmem:[%s2463_s17 + $0x68] sm:$0xff] %vm1474_vm0, %v1471_v60 }
 0x4ea   : > { %v1452_v61 = vpop.xlane.xlu0 %1451 }
 0x4eb   : > { %v1472_v62 = vadd.f32 %v1882_v31, %v1452_v61 }
 0x4ed   : > { %1489 = vst.msk [vmem:[%s2463_s17 + $0x70] sm:$0xff] %vm1474_vm0, %v1472_v62 }
 0x4f2   : > { %v1454_v63 = vpop.xlane.xlu1 %1453 }
 0x4f3   : > { %v1473_v0 = vadd.f32 %v1882_v31, %v1454_v63 }
 0x4f5   : > { %1490 = vst.msk [vmem:[%s2463_s17 + $0x78] sm:$0xff] %vm1474_vm0, %v1473_v0 }
 0x4f6 PF: > { %s18_s24 = sadd.s32 1, %s2147_s24  }
 0x4f7   : > { %p15_p7 = scmp.ge.s32.totalorder %s18_s24, 4  }
 0x4f9   :  { %17 = sbr.rel (!%p15_p7) target bundleno = 1 (0x1), region = 93 }
 0x4fe   :  { %1513 = vsyncpa [#allocation3], 1 }
 0x4ff   :  { %1515 = vsyncpa [#allocation3 + $0x1], 1 }

</bundles_post_ra>
